<compile_context>
chip_gen: v5e
topology: v5e:2x2
jax: 0.10.0
libtpu: 0.0.40
codegen_flags: <defaults>
</compile_context>

<pallas_src>
import numpy as np
import jax
import jax.numpy as jnp
from jax import lax
from jax.experimental import pallas as pl
from jax.experimental.pallas import tpu as pltpu


def gcd(a, b):
    while b:
        a, b = b, a % b
    return a


def _sublane_tile(dtype):
    """Rows per native sublane tile: 8 for 32-bit, 16 for bf16, 32 for 8-bit."""
    return 8 * max(1, 4 // jnp.dtype(dtype).itemsize)


def _make_kernel(shifts, needs_mask, C_in, Cpad):
    """Builds the MSDC3D kernel body.  `shifts`/`needs_mask` are static tuples."""
    T = len(shifts)

    def kernel(x_ref, w_ref, mask_ref, o_ref, xc_ref, a_ref):
        # x_ref   : (1, C_in, S)      flattened-spatial input (lane-dense)
        # w_ref   : (C_out, T*Cpad)   folded tap-weight matrix (constant block)
        # mask_ref: (T, S)            per-tap 0/1 boundary masks (constant block)
        # o_ref   : (1, C_out, S)     lane-dense output
        # xc_ref  : (Cpad, S)  VMEM   channel-padded copy of the input
        # a_ref   : (T*Cpad, S) VMEM  im2col matrix (taps stacked along K)
        S = xc_ref.shape[1]

        # Zero only the channel-pad rows (keeps 0 * uninitialised-garbage NaNs
        # out of the matmul); real channels are overwritten right after.
        if Cpad > C_in:
            xc_ref[C_in:Cpad, :] = jnp.zeros((Cpad - C_in, S), xc_ref.dtype)
        xc_ref[0:C_in, :] = x_ref[0]
        xc = xc_ref[...]

        for t in range(T):                      # static, unrolled tap loop
            sh = shifts[t]
            # Lane rotation == spatial shift in flattened space (XLU); skip for
            # the centre tap.
            piece = xc if sh == 0 else pltpu.roll(xc, shift=sh, axis=1)
            if needs_mask[t]:
                # Zero positions whose (d,h,w) neighbour falls outside the
                # volume (conv zero-padding semantics) and undo the wrap-around.
                piece = piece * mask_ref[t:t + 1, :]
            # Sublane-tile aligned store into the im2col scratch.
            a_ref[t * Cpad:(t + 1) * Cpad, :] = piece

        # One MXU matmul for the whole multi-scale grouped conv:
        # (C_out, K) @ (K, S) -> lane-dense (C_out, S), f32 accumulation.
        o_ref[0] = jnp.dot(
            w_ref[...], a_ref[...], preferred_element_type=jnp.float32
        ).astype(o_ref.dtype)

    return kernel


def msdc3d_forward(x, weights, kernel_sizes, stride=1):
    """x: (N, C_in, D, H, W); weights[i]: (C_out, C_in//groups, k_i, k_i, k_i)."""
    assert stride == 1
    assert all(k % 2 == 1 for k in kernel_sizes)

    N, C_in, D, H, W = x.shape
    C_out = weights[0].shape[0]
    groups = gcd(C_in, C_out)
    cin_g = C_in // groups
    cout_g = C_out // groups
    S = D * H * W
    tile = _sublane_tile(x.dtype)
    Cpad = ((C_in + tile - 1) // tile) * tile   # pad each tap block to a sublane tile

    # ---- trace-time glue: fold all taps of all kernel sizes into one weight
    # matrix (C_out, T*Cpad), merging duplicate spatial offsets.  Built in the
    # WEIGHT dtype (no silent downcast to x.dtype).  Structural zeros
    # (out-of-group / channel-pad columns) are cheap relative to the
    # M=C_out-bound matmul and buy a single MXU dot instead of T tiny ones.
    w_dtype = weights[0].dtype
    tap_w = {}
    order = []
    for w, k in zip(weights, kernel_sizes):
        p = k // 2
        dense = jnp.zeros((C_out, C_in, k, k, k), w_dtype)
        for g in range(groups):
            dense = dense.at[g * cout_g:(g + 1) * cout_g,
                             g * cin_g:(g + 1) * cin_g].set(
                                 w.astype(w_dtype)[g * cout_g:(g + 1) * cout_g])
        for kd in range(k):
            for kh in range(k):
                for kw in range(k):
                    key = (kd - p, kh - p, kw - p)
                    wt = dense[:, :, kd, kh, kw]            # (C_out, C_in)
                    if key in tap_w:
                        tap_w[key] = tap_w[key] + wt        # merge duplicate taps
                    else:
                        tap_w[key] = wt
                        order.append(key)
    T = len(order)
    w_mat = jnp.concatenate(
        [jnp.pad(tap_w[key], ((0, 0), (0, Cpad - C_in))) for key in order],
        axis=1)                                             # (C_out, T*Cpad)

    # ---- per-tap lane shifts and boundary masks (host-side constants) ----
    d_i = np.arange(D)[:, None, None]
    h_i = np.arange(H)[None, :, None]
    w_i = np.arange(W)[None, None, :]
    shifts, mask_rows, needs_mask = [], [], []
    for (dd, dh, dw) in order:
        off = dd * H * W + dh * W + dw                      # flat neighbour offset
        shifts.append(int((-off) % S))                      # roll amount (jnp.roll conv.)
        valid = ((d_i + dd >= 0) & (d_i + dd < D) &
                 (h_i + dh >= 0) & (h_i + dh < H) &
                 (w_i + dw >= 0) & (w_i + dw < W))
        mask_rows.append(valid.reshape(-1))
        needs_mask.append(not bool(valid.all()))
    mask_arr = jnp.asarray(np.stack(mask_rows).astype(np.float32)).astype(x.dtype)

    kernel = _make_kernel(tuple(shifts), tuple(needs_mask), C_in, Cpad)

    # Input goes in as a free reshape (N, C_in, S); output comes out lane-dense
    # as (N, C_out, S) and is reshaped (free) straight back to NCDHW.
    out_flat = pl.pallas_call(
        kernel,
        out_shape=jax.ShapeDtypeStruct((N, C_out, S), x.dtype),
        grid_spec=pltpu.PrefetchScalarGridSpec(
            num_scalar_prefetch=0,
            grid=(N,),                       # one grid step per batch element
            in_specs=[
                pl.BlockSpec((1, C_in, S), lambda n: (n, 0, 0)),
                pl.BlockSpec((C_out, T * Cpad), lambda n: (0, 0)),   # constant block
                pl.BlockSpec((T, S), lambda n: (0, 0)),              # constant block
            ],
            out_specs=pl.BlockSpec((1, C_out, S), lambda n: (n, 0, 0)),
            scratch_shapes=[
                pltpu.VMEM((Cpad, S), x.dtype),        # channel-padded input
                pltpu.VMEM((T * Cpad, S), x.dtype),    # im2col matrix
            ],
        ),
        compiler_params=pltpu.CompilerParams(dimension_semantics=("parallel",)),
    )(x.reshape(N, C_in, S), w_mat, mask_arr)

    return out_flat.reshape(N, C_out, D, H, W)


def msdc3d_reference(x, weights, kernel_sizes, stride=1):
    """Pure-JAX reference matching the PyTorch module (grouped 3D convs, summed)."""
    C_in = x.shape[1]
    C_out = weights[0].shape[0]
    groups = gcd(C_in, C_out)
    outs = []
    for w, k in zip(weights, kernel_sizes):
        pad = k // 2
        outs.append(lax.conv_general_dilated(
            x, w, window_strides=(stride,) * 3,
            padding=[(pad, pad)] * 3,
            dimension_numbers=('NCDHW', 'OIDHW', 'NCDHW'),
            feature_group_count=groups))
    return sum(outs)


if __name__ == "__main__":
    key = jax.random.PRNGKey(0)

    # Small shapes consistent with the module.
    N, C_in, C_out = 2, 4, 8          # groups = gcd(4, 8) = 4
    D = H = W = 8
    kernel_sizes = (1, 3)             # multi-scale depthwise/grouped convs
    stride = 1
    groups = gcd(C_in, C_out)

    keys = jax.random.split(key, 1 + len(kernel_sizes))
    # Quantise the test data onto grids that are exact in bf16 (weights onto a
    # 2^-8 grid so tap-merged sums stay exact too).  Then kernel-vs-XLA
    # agreement does not depend on which MXU f32 precision path each side
    # picks; the only residual difference is f32 accumulation order (~1e-6).
    x = jax.random.normal(keys[0], (N, C_in, D, H, W), jnp.float32)
    x = x.astype(jnp.bfloat16).astype(jnp.float32)
    weights = []
    for kw, k in zip(keys[1:], kernel_sizes):
        w = 0.1 * jax.random.normal(kw, (C_out, C_in // groups, k, k, k),
                                    jnp.float32)
        weights.append(jnp.round(w * 256.0) / 256.0)

    out = msdc3d_forward(x, weights, kernel_sizes, stride)
    out = jax.block_until_ready(out)

    ref = msdc3d_reference(x, weights, kernel_sizes, stride)
    assert out.shape == ref.shape == (N, C_out, D, H, W)
    max_err = float(jnp.max(jnp.abs(out - ref)))
    assert max_err < 1e-3, f"mismatch vs reference: max abs err = {max_err}"

    print("KERNEL_OK")
</pallas_src>

<mosaic_0001>
module attributes {stable_mosaic.version = 11 : i64} {
  func.func @kernel(%arg0: i32, %arg1: memref<1x4x512xf32, #tpu.memory_space<vmem>>, %arg2: memref<8x216xf32, #tpu.memory_space<vmem>>, %arg3: memref<27x512xf32, #tpu.memory_space<vmem>>, %arg4: memref<1x8x512xf32, #tpu.memory_space<vmem>>, %arg5: memref<8x512xf32, #tpu.memory_space<vmem>>, %arg6: memref<216x512xf32, #tpu.memory_space<vmem>>) attributes {dimension_semantics = [#tpu.dimension_semantics<parallel>], iteration_bounds = array<i64: 2>, scalar_prefetch = 0 : i64, scratch_operands = 2 : i64, tpu.core_type = #tpu.core_type<tc>, window_params = [{transform_indices = @transform_0, window_bounds = array<i64: 1, 4, 512>}, {pipeline_mode = #tpu.pipeline_mode<synchronous>, transform_indices = @transform_1, window_bounds = array<i64: 8, 216>}, {pipeline_mode = #tpu.pipeline_mode<synchronous>, transform_indices = @transform_2, window_bounds = array<i64: 27, 512>}, {transform_indices = @transform_3, window_bounds = array<i64: 1, 8, 512>}]} {
    %cst = arith.constant 0.000000e+00 : f32
    %0 = vector.broadcast %cst : f32 to vector<4x512xf32>
    %c4 = arith.constant 4 : index
    %c0 = arith.constant 0 : index
    %1 = vector.load %arg5[%c4, %c0] : memref<8x512xf32, #tpu.memory_space<vmem>>, vector<4x512xf32>
    tpu.vector_store %arg5[%c4, %c0], %0 {strides = array<i32>} : memref<8x512xf32, #tpu.memory_space<vmem>>, vector<4x512xf32>,
    %c0_0 = arith.constant 0 : index
    %c0_1 = arith.constant 0 : index
    %c0_2 = arith.constant 0 : index
    %2 = vector.load %arg1[%c0_0, %c0_1, %c0_2] : memref<1x4x512xf32, #tpu.memory_space<vmem>>, vector<1x4x512xf32>
    %3 = vector.shape_cast %2 : vector<1x4x512xf32> to vector<4x512xf32>
    %c0_3 = arith.constant 0 : index
    %c0_4 = arith.constant 0 : index
    %4 = vector.load %arg5[%c0_3, %c0_4] : memref<8x512xf32, #tpu.memory_space<vmem>>, vector<4x512xf32>
    tpu.vector_store %arg5[%c0_3, %c0_4], %3 {strides = array<i32>} : memref<8x512xf32, #tpu.memory_space<vmem>>, vector<4x512xf32>,
    %c0_5 = arith.constant 0 : index
    %c0_6 = arith.constant 0 : index
    %5 = vector.load %arg5[%c0_5, %c0_6] : memref<8x512xf32, #tpu.memory_space<vmem>>, vector<8x512xf32>
    %c0_7 = arith.constant 0 : index
    %c0_8 = arith.constant 0 : index
    %6 = vector.load %arg6[%c0_7, %c0_8] : memref<216x512xf32, #tpu.memory_space<vmem>>, vector<8x512xf32>
    tpu.vector_store %arg6[%c0_7, %c0_8], %5 {strides = array<i32>} : memref<216x512xf32, #tpu.memory_space<vmem>>, vector<8x512xf32>,
    %c73_i32 = arith.constant 73 : i32
    %7 = tpu.dynamic_rotate %5 by %c73_i32 dim 1 : vector<8x512xf32>, i32 -> vector<8x512xf32>
    %c1 = arith.constant 1 : index
    %c0_9 = arith.constant 0 : index
    %8 = vector.load %arg3[%c1, %c0_9] : memref<27x512xf32, #tpu.memory_space<vmem>>, vector<1x512xf32>
    %9 = vector.broadcast %8 : vector<1x512xf32> to vector<8x512xf32>
    %10 = arith.mulf %7, %9 : vector<8x512xf32>
    %c8 = arith.constant 8 : index
    %c0_10 = arith.constant 0 : index
    %11 = vector.load %arg6[%c8, %c0_10] : memref<216x512xf32, #tpu.memory_space<vmem>>, vector<8x512xf32>
    tpu.vector_store %arg6[%c8, %c0_10], %10 {strides = array<i32>} : memref<216x512xf32, #tpu.memory_space<vmem>>, vector<8x512xf32>,
    %c72_i32 = arith.constant 72 : i32
    %12 = tpu.dynamic_rotate %5 by %c72_i32 dim 1 : vector<8x512xf32>, i32 -> vector<8x512xf32>
    %c2 = arith.constant 2 : index
    %c0_11 = arith.constant 0 : index
    %13 = vector.load %arg3[%c2, %c0_11] : memref<27x512xf32, #tpu.memory_space<vmem>>, vector<1x512xf32>
    %14 = vector.broadcast %13 : vector<1x512xf32> to vector<8x512xf32>
    %15 = arith.mulf %12, %14 : vector<8x512xf32>
    %c16 = arith.constant 16 : index
    %c0_12 = arith.constant 0 : index
    %16 = vector.load %arg6[%c16, %c0_12] : memref<216x512xf32, #tpu.memory_space<vmem>>, vector<8x512xf32>
    tpu.vector_store %arg6[%c16, %c0_12], %15 {strides = array<i32>} : memref<216x512xf32, #tpu.memory_space<vmem>>, vector<8x512xf32>,
    %c71_i32 = arith.constant 71 : i32
    %17 = tpu.dynamic_rotate %5 by %c71_i32 dim 1 : vector<8x512xf32>, i32 -> vector<8x512xf32>
    %c3 = arith.constant 3 : index
    %c0_13 = arith.constant 0 : index
    %18 = vector.load %arg3[%c3, %c0_13] : memref<27x512xf32, #tpu.memory_space<vmem>>, vector<1x512xf32>
    %19 = vector.broadcast %18 : vector<1x512xf32> to vector<8x512xf32>
    %20 = arith.mulf %17, %19 : vector<8x512xf32>
    %c24 = arith.constant 24 : index
    %c0_14 = arith.constant 0 : index
    %21 = vector.load %arg6[%c24, %c0_14] : memref<216x512xf32, #tpu.memory_space<vmem>>, vector<8x512xf32>
    tpu.vector_store %arg6[%c24, %c0_14], %20 {strides = array<i32>} : memref<216x512xf32, #tpu.memory_space<vmem>>, vector<8x512xf32>,
    %c65_i32 = arith.constant 65 : i32
    %22 = tpu.dynamic_rotate %5 by %c65_i32 dim 1 : vector<8x512xf32>, i32 -> vector<8x512xf32>
    %c4_15 = arith.constant 4 : index
    %c0_16 = arith.constant 0 : index
    %23 = vector.load %arg3[%c4_15, %c0_16] : memref<27x512xf32, #tpu.memory_space<vmem>>, vector<1x512xf32>
    %24 = vector.broadcast %23 : vector<1x512xf32> to vector<8x512xf32>
    %25 = arith.mulf %22, %24 : vector<8x512xf32>
    %c32 = arith.constant 32 : index
    %c0_17 = arith.constant 0 : index
    %26 = vector.load %arg6[%c32, %c0_17] : memref<216x512xf32, #tpu.memory_space<vmem>>, vector<8x512xf32>
    tpu.vector_store %arg6[%c32, %c0_17], %25 {strides = array<i32>} : memref<216x512xf32, #tpu.memory_space<vmem>>, vector<8x512xf32>,
    %c64_i32 = arith.constant 64 : i32
    %27 = tpu.dynamic_rotate %5 by %c64_i32 dim 1 : vector<8x512xf32>, i32 -> vector<8x512xf32>
    %c5 = arith.constant 5 : index
    %c0_18 = arith.constant 0 : index
    %28 = vector.load %arg3[%c5, %c0_18] : memref<27x512xf32, #tpu.memory_space<vmem>>, vector<1x512xf32>
    %29 = vector.broadcast %28 : vector<1x512xf32> to vector<8x512xf32>
    %30 = arith.mulf %27, %29 : vector<8x512xf32>
    %c40 = arith.constant 40 : index
    %c0_19 = arith.constant 0 : index
    %31 = vector.load %arg6[%c40, %c0_19] : memref<216x512xf32, #tpu.memory_space<vmem>>, vector<8x512xf32>
    tpu.vector_store %arg6[%c40, %c0_19], %30 {strides = array<i32>} : memref<216x512xf32, #tpu.memory_space<vmem>>, vector<8x512xf32>,
    %c63_i32 = arith.constant 63 : i32
    %32 = tpu.dynamic_rotate %5 by %c63_i32 dim 1 : vector<8x512xf32>, i32 -> vector<8x512xf32>
    %c6 = arith.constant 6 : index
    %c0_20 = arith.constant 0 : index
    %33 = vector.load %arg3[%c6, %c0_20] : memref<27x512xf32, #tpu.memory_space<vmem>>, vector<1x512xf32>
    %34 = vector.broadcast %33 : vector<1x512xf32> to vector<8x512xf32>
    %35 = arith.mulf %32, %34 : vector<8x512xf32>
    %c48 = arith.constant 48 : index
    %c0_21 = arith.constant 0 : index
    %36 = vector.load %arg6[%c48, %c0_21] : memref<216x512xf32, #tpu.memory_space<vmem>>, vector<8x512xf32>
    tpu.vector_store %arg6[%c48, %c0_21], %35 {strides = array<i32>} : memref<216x512xf32, #tpu.memory_space<vmem>>, vector<8x512xf32>,
    %c57_i32 = arith.constant 57 : i32
    %37 = tpu.dynamic_rotate %5 by %c57_i32 dim 1 : vector<8x512xf32>, i32 -> vector<8x512xf32>
    %c7 = arith.constant 7 : index
    %c0_22 = arith.constant 0 : index
    %38 = vector.load %arg3[%c7, %c0_22] : memref<27x512xf32, #tpu.memory_space<vmem>>, vector<1x512xf32>
    %39 = vector.broadcast %38 : vector<1x512xf32> to vector<8x512xf32>
    %40 = arith.mulf %37, %39 : vector<8x512xf32>
    %c56 = arith.constant 56 : index
    %c0_23 = arith.constant 0 : index
    %41 = vector.load %arg6[%c56, %c0_23] : memref<216x512xf32, #tpu.memory_space<vmem>>, vector<8x512xf32>
    tpu.vector_store %arg6[%c56, %c0_23], %40 {strides = array<i32>} : memref<216x512xf32, #tpu.memory_space<vmem>>, vector<8x512xf32>,
    %c56_i32 = arith.constant 56 : i32
    %42 = tpu.dynamic_rotate %5 by %c56_i32 dim 1 : vector<8x512xf32>, i32 -> vector<8x512xf32>
    %c8_24 = arith.constant 8 : index
    %c0_25 = arith.constant 0 : index
    %43 = vector.load %arg3[%c8_24, %c0_25] : memref<27x512xf32, #tpu.memory_space<vmem>>, vector<1x512xf32>
    %44 = vector.broadcast %43 : vector<1x512xf32> to vector<8x512xf32>
    %45 = arith.mulf %42, %44 : vector<8x512xf32>
    %c64 = arith.constant 64 : index
    %c0_26 = arith.constant 0 : index
    %46 = vector.load %arg6[%c64, %c0_26] : memref<216x512xf32, #tpu.memory_space<vmem>>, vector<8x512xf32>
    tpu.vector_store %arg6[%c64, %c0_26], %45 {strides = array<i32>} : memref<216x512xf32, #tpu.memory_space<vmem>>, vector<8x512xf32>,
    %c55_i32 = arith.constant 55 : i32
    %47 = tpu.dynamic_rotate %5 by %c55_i32 dim 1 : vector<8x512xf32>, i32 -> vector<8x512xf32>
    %c9 = arith.constant 9 : index
    %c0_27 = arith.constant 0 : index
    %48 = vector.load %arg3[%c9, %c0_27] : memref<27x512xf32, #tpu.memory_space<vmem>>, vector<1x512xf32>
    %49 = vector.broadcast %48 : vector<1x512xf32> to vector<8x512xf32>
    %50 = arith.mulf %47, %49 : vector<8x512xf32>
    %c72 = arith.constant 72 : index
    %c0_28 = arith.constant 0 : index
    %51 = vector.load %arg6[%c72, %c0_28] : memref<216x512xf32, #tpu.memory_space<vmem>>, vector<8x512xf32>
    tpu.vector_store %arg6[%c72, %c0_28], %50 {strides = array<i32>} : memref<216x512xf32, #tpu.memory_space<vmem>>, vector<8x512xf32>,
    %c9_i32 = arith.constant 9 : i32
    %52 = tpu.dynamic_rotate %5 by %c9_i32 dim 1 : vector<8x512xf32>, i32 -> vector<8x512xf32>
    %c10 = arith.constant 10 : index
    %c0_29 = arith.constant 0 : index
    %53 = vector.load %arg3[%c10, %c0_29] : memref<27x512xf32, #tpu.memory_space<vmem>>, vector<1x512xf32>
    %54 = vector.broadcast %53 : vector<1x512xf32> to vector<8x512xf32>
    %55 = arith.mulf %52, %54 : vector<8x512xf32>
    %c80 = arith.constant 80 : index
    %c0_30 = arith.constant 0 : index
    %56 = vector.load %arg6[%c80, %c0_30] : memref<216x512xf32, #tpu.memory_space<vmem>>, vector<8x512xf32>
    tpu.vector_store %arg6[%c80, %c0_30], %55 {strides = array<i32>} : memref<216x512xf32, #tpu.memory_space<vmem>>, vector<8x512xf32>,
    %c8_i32 = arith.constant 8 : i32
    %57 = tpu.dynamic_rotate %5 by %c8_i32 dim 1 : vector<8x512xf32>, i32 -> vector<8x512xf32>
    %c11 = arith.constant 11 : index
    %c0_31 = arith.constant 0 : index
    %58 = vector.load %arg3[%c11, %c0_31] : memref<27x512xf32, #tpu.memory_space<vmem>>, vector<1x512xf32>
    %59 = vector.broadcast %58 : vector<1x512xf32> to vector<8x512xf32>
    %60 = arith.mulf %57, %59 : vector<8x512xf32>
    %c88 = arith.constant 88 : index
    %c0_32 = arith.constant 0 : index
    %61 = vector.load %arg6[%c88, %c0_32] : memref<216x512xf32, #tpu.memory_space<vmem>>, vector<8x512xf32>
    tpu.vector_store %arg6[%c88, %c0_32], %60 {strides = array<i32>} : memref<216x512xf32, #tpu.memory_space<vmem>>, vector<8x512xf32>,
    %c7_i32 = arith.constant 7 : i32
    %62 = tpu.dynamic_rotate %5 by %c7_i32 dim 1 : vector<8x512xf32>, i32 -> vector<8x512xf32>
    %c12 = arith.constant 12 : index
    %c0_33 = arith.constant 0 : index
    %63 = vector.load %arg3[%c12, %c0_33] : memref<27x512xf32, #tpu.memory_space<vmem>>, vector<1x512xf32>
    %64 = vector.broadcast %63 : vector<1x512xf32> to vector<8x512xf32>
    %65 = arith.mulf %62, %64 : vector<8x512xf32>
    %c96 = arith.constant 96 : index
    %c0_34 = arith.constant 0 : index
    %66 = vector.load %arg6[%c96, %c0_34] : memref<216x512xf32, #tpu.memory_space<vmem>>, vector<8x512xf32>
    tpu.vector_store %arg6[%c96, %c0_34], %65 {strides = array<i32>} : memref<216x512xf32, #tpu.memory_space<vmem>>, vector<8x512xf32>,
    %c1_i32 = arith.constant 1 : i32
    %67 = tpu.dynamic_rotate %5 by %c1_i32 dim 1 : vector<8x512xf32>, i32 -> vector<8x512xf32>
    %c13 = arith.constant 13 : index
    %c0_35 = arith.constant 0 : index
    %68 = vector.load %arg3[%c13, %c0_35] : memref<27x512xf32, #tpu.memory_space<vmem>>, vector<1x512xf32>
    %69 = vector.broadcast %68 : vector<1x512xf32> to vector<8x512xf32>
    %70 = arith.mulf %67, %69 : vector<8x512xf32>
    %c104 = arith.constant 104 : index
    %c0_36 = arith.constant 0 : index
    %71 = vector.load %arg6[%c104, %c0_36] : memref<216x512xf32, #tpu.memory_space<vmem>>, vector<8x512xf32>
    tpu.vector_store %arg6[%c104, %c0_36], %70 {strides = array<i32>} : memref<216x512xf32, #tpu.memory_space<vmem>>, vector<8x512xf32>,
    %c511_i32 = arith.constant 511 : i32
    %72 = tpu.dynamic_rotate %5 by %c511_i32 dim 1 : vector<8x512xf32>, i32 -> vector<8x512xf32>
    %c14 = arith.constant 14 : index
    %c0_37 = arith.constant 0 : index
    %73 = vector.load %arg3[%c14, %c0_37] : memref<27x512xf32, #tpu.memory_space<vmem>>, vector<1x512xf32>
    %74 = vector.broadcast %73 : vector<1x512xf32> to vector<8x512xf32>
    %75 = arith.mulf %72, %74 : vector<8x512xf32>
    %c112 = arith.constant 112 : index
    %c0_38 = arith.constant 0 : index
    %76 = vector.load %arg6[%c112, %c0_38] : memref<216x512xf32, #tpu.memory_space<vmem>>, vector<8x512xf32>
    tpu.vector_store %arg6[%c112, %c0_38], %75 {strides = array<i32>} : memref<216x512xf32, #tpu.memory_space<vmem>>, vector<8x512xf32>,
    %c505_i32 = arith.constant 505 : i32
    %77 = tpu.dynamic_rotate %5 by %c505_i32 dim 1 : vector<8x512xf32>, i32 -> vector<8x512xf32>
    %c15 = arith.constant 15 : index
    %c0_39 = arith.constant 0 : index
    %78 = vector.load %arg3[%c15, %c0_39] : memref<27x512xf32, #tpu.memory_space<vmem>>, vector<1x512xf32>
    %79 = vector.broadcast %78 : vector<1x512xf32> to vector<8x512xf32>
    %80 = arith.mulf %77, %79 : vector<8x512xf32>
    %c120 = arith.constant 120 : index
    %c0_40 = arith.constant 0 : index
    %81 = vector.load %arg6[%c120, %c0_40] : memref<216x512xf32, #tpu.memory_space<vmem>>, vector<8x512xf32>
    tpu.vector_store %arg6[%c120, %c0_40], %80 {strides = array<i32>} : memref<216x512xf32, #tpu.memory_space<vmem>>, vector<8x512xf32>,
    %c504_i32 = arith.constant 504 : i32
    %82 = tpu.dynamic_rotate %5 by %c504_i32 dim 1 : vector<8x512xf32>, i32 -> vector<8x512xf32>
    %c16_41 = arith.constant 16 : index
    %c0_42 = arith.constant 0 : index
    %83 = vector.load %arg3[%c16_41, %c0_42] : memref<27x512xf32, #tpu.memory_space<vmem>>, vector<1x512xf32>
    %84 = vector.broadcast %83 : vector<1x512xf32> to vector<8x512xf32>
    %85 = arith.mulf %82, %84 : vector<8x512xf32>
    %c128 = arith.constant 128 : index
    %c0_43 = arith.constant 0 : index
    %86 = vector.load %arg6[%c128, %c0_43] : memref<216x512xf32, #tpu.memory_space<vmem>>, vector<8x512xf32>
    tpu.vector_store %arg6[%c128, %c0_43], %85 {strides = array<i32>} : memref<216x512xf32, #tpu.memory_space<vmem>>, vector<8x512xf32>,
    %c503_i32 = arith.constant 503 : i32
    %87 = tpu.dynamic_rotate %5 by %c503_i32 dim 1 : vector<8x512xf32>, i32 -> vector<8x512xf32>
    %c17 = arith.constant 17 : index
    %c0_44 = arith.constant 0 : index
    %88 = vector.load %arg3[%c17, %c0_44] : memref<27x512xf32, #tpu.memory_space<vmem>>, vector<1x512xf32>
    %89 = vector.broadcast %88 : vector<1x512xf32> to vector<8x512xf32>
    %90 = arith.mulf %87, %89 : vector<8x512xf32>
    %c136 = arith.constant 136 : index
    %c0_45 = arith.constant 0 : index
    %91 = vector.load %arg6[%c136, %c0_45] : memref<216x512xf32, #tpu.memory_space<vmem>>, vector<8x512xf32>
    tpu.vector_store %arg6[%c136, %c0_45], %90 {strides = array<i32>} : memref<216x512xf32, #tpu.memory_space<vmem>>, vector<8x512xf32>,
    %c457_i32 = arith.constant 457 : i32
    %92 = tpu.dynamic_rotate %5 by %c457_i32 dim 1 : vector<8x512xf32>, i32 -> vector<8x512xf32>
    %c18 = arith.constant 18 : index
    %c0_46 = arith.constant 0 : index
    %93 = vector.load %arg3[%c18, %c0_46] : memref<27x512xf32, #tpu.memory_space<vmem>>, vector<1x512xf32>
    %94 = vector.broadcast %93 : vector<1x512xf32> to vector<8x512xf32>
    %95 = arith.mulf %92, %94 : vector<8x512xf32>
    %c144 = arith.constant 144 : index
    %c0_47 = arith.constant 0 : index
    %96 = vector.load %arg6[%c144, %c0_47] : memref<216x512xf32, #tpu.memory_space<vmem>>, vector<8x512xf32>
    tpu.vector_store %arg6[%c144, %c0_47], %95 {strides = array<i32>} : memref<216x512xf32, #tpu.memory_space<vmem>>, vector<8x512xf32>,
    %c456_i32 = arith.constant 456 : i32
    %97 = tpu.dynamic_rotate %5 by %c456_i32 dim 1 : vector<8x512xf32>, i32 -> vector<8x512xf32>
    %c19 = arith.constant 19 : index
    %c0_48 = arith.constant 0 : index
    %98 = vector.load %arg3[%c19, %c0_48] : memref<27x512xf32, #tpu.memory_space<vmem>>, vector<1x512xf32>
    %99 = vector.broadcast %98 : vector<1x512xf32> to vector<8x512xf32>
    %100 = arith.mulf %97, %99 : vector<8x512xf32>
    %c152 = arith.constant 152 : index
    %c0_49 = arith.constant 0 : index
    %101 = vector.load %arg6[%c152, %c0_49] : memref<216x512xf32, #tpu.memory_space<vmem>>, vector<8x512xf32>
    tpu.vector_store %arg6[%c152, %c0_49], %100 {strides = array<i32>} : memref<216x512xf32, #tpu.memory_space<vmem>>, vector<8x512xf32>,
    %c455_i32 = arith.constant 455 : i32
    %102 = tpu.dynamic_rotate %5 by %c455_i32 dim 1 : vector<8x512xf32>, i32 -> vector<8x512xf32>
    %c20 = arith.constant 20 : index
    %c0_50 = arith.constant 0 : index
    %103 = vector.load %arg3[%c20, %c0_50] : memref<27x512xf32, #tpu.memory_space<vmem>>, vector<1x512xf32>
    %104 = vector.broadcast %103 : vector<1x512xf32> to vector<8x512xf32>
    %105 = arith.mulf %102, %104 : vector<8x512xf32>
    %c160 = arith.constant 160 : index
    %c0_51 = arith.constant 0 : index
    %106 = vector.load %arg6[%c160, %c0_51] : memref<216x512xf32, #tpu.memory_space<vmem>>, vector<8x512xf32>
    tpu.vector_store %arg6[%c160, %c0_51], %105 {strides = array<i32>} : memref<216x512xf32, #tpu.memory_space<vmem>>, vector<8x512xf32>,
    %c449_i32 = arith.constant 449 : i32
    %107 = tpu.dynamic_rotate %5 by %c449_i32 dim 1 : vector<8x512xf32>, i32 -> vector<8x512xf32>
    %c21 = arith.constant 21 : index
    %c0_52 = arith.constant 0 : index
    %108 = vector.load %arg3[%c21, %c0_52] : memref<27x512xf32, #tpu.memory_space<vmem>>, vector<1x512xf32>
    %109 = vector.broadcast %108 : vector<1x512xf32> to vector<8x512xf32>
    %110 = arith.mulf %107, %109 : vector<8x512xf32>
    %c168 = arith.constant 168 : index
    %c0_53 = arith.constant 0 : index
    %111 = vector.load %arg6[%c168, %c0_53] : memref<216x512xf32, #tpu.memory_space<vmem>>, vector<8x512xf32>
    tpu.vector_store %arg6[%c168, %c0_53], %110 {strides = array<i32>} : memref<216x512xf32, #tpu.memory_space<vmem>>, vector<8x512xf32>,
    %c448_i32 = arith.constant 448 : i32
    %112 = tpu.dynamic_rotate %5 by %c448_i32 dim 1 : vector<8x512xf32>, i32 -> vector<8x512xf32>
    %c22 = arith.constant 22 : index
    %c0_54 = arith.constant 0 : index
    %113 = vector.load %arg3[%c22, %c0_54] : memref<27x512xf32, #tpu.memory_space<vmem>>, vector<1x512xf32>
    %114 = vector.broadcast %113 : vector<1x512xf32> to vector<8x512xf32>
    %115 = arith.mulf %112, %114 : vector<8x512xf32>
    %c176 = arith.constant 176 : index
    %c0_55 = arith.constant 0 : index
    %116 = vector.load %arg6[%c176, %c0_55] : memref<216x512xf32, #tpu.memory_space<vmem>>, vector<8x512xf32>
    tpu.vector_store %arg6[%c176, %c0_55], %115 {strides = array<i32>} : memref<216x512xf32, #tpu.memory_space<vmem>>, vector<8x512xf32>,
    %c447_i32 = arith.constant 447 : i32
    %117 = tpu.dynamic_rotate %5 by %c447_i32 dim 1 : vector<8x512xf32>, i32 -> vector<8x512xf32>
    %c23 = arith.constant 23 : index
    %c0_56 = arith.constant 0 : index
    %118 = vector.load %arg3[%c23, %c0_56] : memref<27x512xf32, #tpu.memory_space<vmem>>, vector<1x512xf32>
    %119 = vector.broadcast %118 : vector<1x512xf32> to vector<8x512xf32>
    %120 = arith.mulf %117, %119 : vector<8x512xf32>
    %c184 = arith.constant 184 : index
    %c0_57 = arith.constant 0 : index
    %121 = vector.load %arg6[%c184, %c0_57] : memref<216x512xf32, #tpu.memory_space<vmem>>, vector<8x512xf32>
    tpu.vector_store %arg6[%c184, %c0_57], %120 {strides = array<i32>} : memref<216x512xf32, #tpu.memory_space<vmem>>, vector<8x512xf32>,
    %c441_i32 = arith.constant 441 : i32
    %122 = tpu.dynamic_rotate %5 by %c441_i32 dim 1 : vector<8x512xf32>, i32 -> vector<8x512xf32>
    %c24_58 = arith.constant 24 : index
    %c0_59 = arith.constant 0 : index
    %123 = vector.load %arg3[%c24_58, %c0_59] : memref<27x512xf32, #tpu.memory_space<vmem>>, vector<1x512xf32>
    %124 = vector.broadcast %123 : vector<1x512xf32> to vector<8x512xf32>
    %125 = arith.mulf %122, %124 : vector<8x512xf32>
    %c192 = arith.constant 192 : index
    %c0_60 = arith.constant 0 : index
    %126 = vector.load %arg6[%c192, %c0_60] : memref<216x512xf32, #tpu.memory_space<vmem>>, vector<8x512xf32>
    tpu.vector_store %arg6[%c192, %c0_60], %125 {strides = array<i32>} : memref<216x512xf32, #tpu.memory_space<vmem>>, vector<8x512xf32>,
    %c440_i32 = arith.constant 440 : i32
    %127 = tpu.dynamic_rotate %5 by %c440_i32 dim 1 : vector<8x512xf32>, i32 -> vector<8x512xf32>
    %c25 = arith.constant 25 : index
    %c0_61 = arith.constant 0 : index
    %128 = vector.load %arg3[%c25, %c0_61] : memref<27x512xf32, #tpu.memory_space<vmem>>, vector<1x512xf32>
    %129 = vector.broadcast %128 : vector<1x512xf32> to vector<8x512xf32>
    %130 = arith.mulf %127, %129 : vector<8x512xf32>
    %c200 = arith.constant 200 : index
    %c0_62 = arith.constant 0 : index
    %131 = vector.load %arg6[%c200, %c0_62] : memref<216x512xf32, #tpu.memory_space<vmem>>, vector<8x512xf32>
    tpu.vector_store %arg6[%c200, %c0_62], %130 {strides = array<i32>} : memref<216x512xf32, #tpu.memory_space<vmem>>, vector<8x512xf32>,
    %c439_i32 = arith.constant 439 : i32
    %132 = tpu.dynamic_rotate %5 by %c439_i32 dim 1 : vector<8x512xf32>, i32 -> vector<8x512xf32>
    %c26 = arith.constant 26 : index
    %c0_63 = arith.constant 0 : index
    %133 = vector.load %arg3[%c26, %c0_63] : memref<27x512xf32, #tpu.memory_space<vmem>>, vector<1x512xf32>
    %134 = vector.broadcast %133 : vector<1x512xf32> to vector<8x512xf32>
    %135 = arith.mulf %132, %134 : vector<8x512xf32>
    %c208 = arith.constant 208 : index
    %c0_64 = arith.constant 0 : index
    %136 = vector.load %arg6[%c208, %c0_64] : memref<216x512xf32, #tpu.memory_space<vmem>>, vector<8x512xf32>
    tpu.vector_store %arg6[%c208, %c0_64], %135 {strides = array<i32>} : memref<216x512xf32, #tpu.memory_space<vmem>>, vector<8x512xf32>,
    %c0_65 = arith.constant 0 : index
    %c0_66 = arith.constant 0 : index
    %137 = vector.load %arg2[%c0_65, %c0_66] : memref<8x216xf32, #tpu.memory_space<vmem>>, vector<8x216xf32>
    %c0_67 = arith.constant 0 : index
    %c0_68 = arith.constant 0 : index
    %138 = vector.load %arg6[%c0_67, %c0_68] : memref<216x512xf32, #tpu.memory_space<vmem>>, vector<216x512xf32>
    %cst_69 = arith.constant dense<0.000000e+00> : vector<8x512xf32>
    %139 = tpu.matmul %137, %138, %cst_69 {dimension_numbers = #tpu.dot_dimension_numbers<[1], [0], [0], [1], [0, 0, 1, 1], [], []>} : vector<8x216xf32>, vector<216x512xf32>, vector<8x512xf32> -> vector<8x512xf32>
    %c0_70 = arith.constant 0 : index
    %c0_71 = arith.constant 0 : index
    %c0_72 = arith.constant 0 : index
    %140 = vector.load %arg4[%c0_70, %c0_71, %c0_72] : memref<1x8x512xf32, #tpu.memory_space<vmem>>, vector<1x8x512xf32>
    %141 = vector.shape_cast %140 : vector<1x8x512xf32> to vector<8x512xf32>
    %142 = vector.shape_cast %139 : vector<8x512xf32> to vector<1x8x512xf32>
    tpu.vector_store %arg4[%c0_70, %c0_71, %c0_72], %142 {strides = array<i32>} : memref<1x8x512xf32, #tpu.memory_space<vmem>>, vector<1x8x512xf32>,
    return
  }
  func.func @transform_0(%arg0: i32) -> (i32, i32, i32) {
    %c0_i32 = arith.constant 0 : i32
    %c0_i32_0 = arith.constant 0 : i32
    %c0_i32_1 = arith.constant 0 : i32
    return %arg0, %c0_i32, %c0_i32_0 : i32, i32, i32
  }
  func.func @transform_1(%arg0: i32) -> (i32, i32) {
    %c0_i32 = arith.constant 0 : i32
    %c0_i32_0 = arith.constant 0 : i32
    %c0_i32_1 = arith.constant 0 : i32
    return %c0_i32, %c0_i32_0 : i32, i32
  }
  func.func @transform_2(%arg0: i32) -> (i32, i32) {
    %c0_i32 = arith.constant 0 : i32
    %c0_i32_0 = arith.constant 0 : i32
    %c0_i32_1 = arith.constant 0 : i32
    return %c0_i32, %c0_i32_0 : i32, i32
  }
  func.func @transform_3(%arg0: i32) -> (i32, i32, i32) {
    %c0_i32 = arith.constant 0 : i32
    %c0_i32_0 = arith.constant 0 : i32
    %c0_i32_1 = arith.constant 0 : i32
    return %arg0, %c0_i32, %c0_i32_0 : i32, i32, i32
  }
}

</mosaic_0001>

<bundles_post_ra>
// kernel: tpu_custom_call.1
= control target key start
LH: loop header
LB: loop body
LE: loop exit
PB: predicated region body
PF: predicated region fallthrough
CT: control target
= control target key end

     0   :  { %8 = vsyncpa [#allocation5], 0  ;;  %s2559_s0 = inlined_call_operand.hbm [shape: f32[2,4,512], index: 0, kind: input, shape index: {}]   ;;  %s2560_s1 = inlined_call_operand.hbm [shape: f32[8,216], index: 1, kind: input, shape index: {}]   ;;  %s2561_s2 = inlined_call_operand.hbm [shape: f32[27,512], index: 2, kind: input, shape index: {}]   ;;  %s2562_s3 = inlined_call_operand.hbm [shape: f32[2,8,512], index: 3, kind: output, shape index: {}]  }
   0x1   :  { %10 = vsyncpa [#allocation5 + $0x1], 0 }
   0x2   :  { %11 = vsyncpa [#allocation8], 0 }
   0x3   :  { %12 = vsyncpa [#allocation6], 0 }
   0x4   :  { %14 = vsyncpa [#allocation6 + $0x1], 0  ;;  %s1669_s12 = smov 0   ;;  %s1671_s13 = smov 0  }
   0x5   :  { %s1673_s14 = smov 0   ;;  %s1675_s15 = smov 0  }
   0x6 LB: > { %s1690_s16 = sadd.s32 4294967295, %s1625_s15   ;;  %s1352_s17 = sadd.s32 4294967294, %s1625_s15   ;;  %s1625_s15 = sphi %s1675_s15, %s2637_s15   ;;  %s1621_s14 = sphi %s1673_s14, %s2636_s14   ;;  %s1617_s13 = sphi %s1671_s13, %s2635_s13   ;;  %s1613_s12 = sphi %s1669_s12, %s2634_s12  }
   0x7   : > { %p40_p0 = scmp.ne.s32.totalorder %s1617_s13, %s1613_s12  ;;  %p41_p1 = scmp.eq.s32.totalorder %s1690_s16, 0 }
   0x8   : > { %p106_p2 = scmp.eq.s32.totalorder %s1690_s16, 1  ;;  %p112_p3 = scmp.eq.s32.totalorder %s1352_s17, 1 }
   0x9   : > { %p1699_p4 = por %p41_p1, %p40_p0  ;;  %p1353_p5 = scmp.ge.s32.totalorder %s1625_s15, 1 }
   0xa   : > { %p1704_p6 = por %p112_p3, %p40_p0  ;;  %p119_p7 = scmp.lt.s32.totalorder %s1625_s15, 3 }
   0xb   : > { %s131_s22 = sshll.u32 %s2560_s1, 4  ;;  %s1627_s24 = smov [#allocation7]   ;;  %s132_s22 = int_to_ptr.hbm [resolvable:$true] %s131_s22 }
   0xc   : > { %p1712_p8 = pnand %p1353_p5, %p119_p7  ;;  %s133_s25 = sshll.u32 %s1627_s24, 4  ;;  %s134_s25 = int_to_ptr.vmem [resolvable:$true] %s133_s25 }
   0xd   : > { %s142_s28 = sshll.u32 %s2561_s2, 4  ;;  %s1628_s29 = smov [#allocation9]   ;;  %s143_s28 = int_to_ptr.hbm [resolvable:$true] %s142_s28 }
   0xe   : > { %p1388_p10 = pneg %p1712_p8  ;;  %s144_s30 = sshll.u32 %s1628_s29, 4  ;;  %s145_s30 = int_to_ptr.vmem [resolvable:$true] %s144_s30 }
   0xf   : > { %s1629_s4 = smov 512   ;;  %s1630_s5 = smov 32  }
  0x10   : > { %p1389_p11 = pnand %p1388_p10, %p41_p1  ;;  %s1725_s6 = sadd.s32 1, %s1625_s15  }
  0x11   : > { %s24_s7 = ssub.s32 %s1625_s15, %s1725_s6  ;;  %s27_s8 = sadd.s32 1, %s1621_s14 }
  0x12   : > { %1391 = dma.hbm_to_vmem [thread:$0]  (!%p1389_p11), %s132_s22, 256, %s134_s25, [#allocation8]  }
  0x13   : > { %1394 = dma.hbm_to_vmem [thread:$0]  (!%p1389_p11), %s143_s28, 2048, %s145_s30, [#allocation8], %s1629_s4, %s1629_s4, %s1630_s5  }
  0x14   : > { %p25_p12 = scmp.eq.s32.totalorder %s24_s7, 0  ;;  %p34_p13 = scmp.ne.s32.totalorder %s1621_s14, %s1617_s13 }
  0x15   : > { %p35_p0 = scmp.eq.s32.totalorder %s1625_s15, 0  ;;  %p1405_p7 = scmp.lt.s32.totalorder %s1625_s15, 2 }
  0x16   : > { %s1734_s9 = scalar_select %p25_p12, %s1621_s14, %s27_s8  }
  0x17   : > { %p36_p3 = por %p35_p0, %p34_p13  ;;  %p1738_p5 = por %p106_p2, %p34_p13 }
  0x18   : > { %s158_s11 = sand.u32 1, %s1621_s14   ;;  %s1374_s20 = sshll.u32 %s1625_s15, 4 }
  0x19   : > { %s1357_s17 = sshll.u32 %s158_s11, 4  ;;  %s167_s24 = scalar_lea.hbm %s2559_s0, %s1374_s20 }
  0x1a   : > { %s162_s25 = scalar_lea.vmem [#allocation4], %s1357_s17  ;;  %s169_s27 = sshll.u32 %s167_s24, 4  ;;  %s170_s27 = int_to_ptr.hbm [resolvable:$true] %s169_s27 }
  0x1b   : > { %s171_s26 = sshll.u32 %s162_s25, 4  ;;  %p1748_p10 = pnand %p1405_p7, %p36_p3  ;;  %s172_s26 = int_to_ptr.vmem [resolvable:$true] %s171_s26 }
  0x1c   : > { %s159_s29 = scalar_lea.sflag [#allocation5], %s158_s11  ;;  %s1525_s30 = sshra.s32 %s170_s27, 4  ;;  %s1526_s30 = int_to_ptr.hbm [resolvable:$true] %s1525_s30 }
  0x1d   : > { %s1527_s4 = scalar_lea.hbm %s1526_s30, 16  ;;  %p1529_p11 = pneg %p1748_p10 }
  0x1e   : > { %p1528_p2 = scmp.ne.s32.totalorder %s1526_s30, %s1527_s4  ;;  %s1532_s8 = scalar_lea.hbm %s2559_s0, 32 }
  0x1f   : > { %p1533_p0 = scmp.lt.s32.totalorder %s1526_s30, %s2559_s0  ;;  %p1534_p3 = scmp.lt.s32.totalorder %s1532_s8, %s1527_s4 }
  0x20   : > { %p1530_p12 = pnand %p1529_p11, %p1528_p2 }
  0x21   : > { %p1535_p7 = por %p1534_p3, %p1533_p0 }
  0x22   : > { %p1531_p13 = pneg %p1530_p12 }
  0x24   : > { %p1536_p9 = pnand %p1535_p7, %p1531_p13 }
  0x26   : > { %1539 = shalt.err (!%p1536_p9)
}
  0x27   : > { %1398 = dma.hbm_to_vmem [thread:$0]  (!%p1748_p10), %s170_s27, 256, %s172_s26, %s159_s29  }
  0x28   : > { %180 = sbr.rel (%p1712_p8) target bundleno = 525 (0x20d), region = 32 }
  0x2d   : > { %s1765_s11 = sand.u32 1, %s1617_s13  }
  0x2e   : > { %s1361_s21 = sshll.u32 %s1765_s11, 4  ;;  %s183_s22 = scalar_lea.sflag [#allocation5], %s1765_s11 }
  0x2f   : > { %s186_s24 = scalar_lea.vmem [#allocation4], %s1361_s21 }
  0x30   : > { %1600 = dma.done.wait (%p1699_p4), %s183_s22, 256  }
  0x31   : > { %1602 = vsyncadd (%p1699_p4), %s183_s22, 4294967040 }
  0x32   : > { %1604 = dma.done.wait (%p41_p1), [#allocation8], 2304  }
  0x33   : > { %1606 = vsyncadd (%p41_p1), [#allocation8], 4294964992  ;;  %v1631_v0 = vmov 0.0   ;;  %v224_v1 = vld [vmem:[%s186_s24] sm:$0xff]  ;;  %v225_v2 = vld [vmem:[%s186_s24 + $0x8] sm:$0xff]  ;;  %s1632_s18 = smov 127   ;;  %v259_v13 = vlaneseq }
  0x34   : > { %221 = vst [vmem:[#allocation2] sm:$0xf0] %v1631_v0  ;;  %s1633_s23 = smov 121   ;;  %s1634_s25 = smov 1  }
  0x35   : > { %220 = vst [vmem:[#allocation2 + $0x10] sm:$0xf0] %v1631_v0  ;;  %s1635_s26 = smov 7   ;;  %s1636_s27 = smov 8   ;;  %v1871_v15 = vand.u32 127, %v259_v13 }
  0x36   : > { %222 = vst [vmem:[#allocation2 + $0x18] sm:$0xf0] %v1631_v0  ;;  %s1637_s28 = smov 55   ;;  %s1638_s29 = smov 9  }
  0x37   : > { %223 = vst [vmem:[#allocation2 + $0x8] sm:$0xf0] %v1631_v0  ;;  %s1639_s30 = smov 56   ;;  %s1640_s4 = smov 57   ;;  %vm709_vm0 = vcmp.lt.s32.totalorder %v1871_v15, 121  ;;  %vm677_vm1 = vcmp.lt.s32.totalorder %v1871_v15, 127 }
  0x38   : > { %228 = vst [vmem:[#allocation1] ss:$2 sm:$0xff] %v224_v1  ;;  %s1641_s5 = smov 63   ;;  %s1642_s7 = smov 64   ;;  %vm645_vm2 = vcmp.lt.s32.totalorder %v1871_v15, 1  ;;  %vm613_vm3 = vcmp.lt.s32.totalorder %v1871_v15, 7 }
  0x39   : > { %230 = vst [vmem:[#allocation1 + $0x10] ss:$2 sm:$0xff] %v225_v2  ;;  %s1643_s8 = smov 65   ;;  %s1644_s17 = smov 71   ;;  %vm581_vm4 = vcmp.lt.s32.totalorder %v1871_v15, 8  ;;  %vm517_vm5 = vcmp.lt.s32.totalorder %v1871_v15, 55 }
  0x3a   : > { %v1873_v16 = vld [vmem:[#allocation9 + $0x27] ss:$8 sm:$0xf]  ;;  %v1881_v18 = vld [vmem:[#allocation9 + $0x26] ss:$8 sm:$0xf] }
  0x3b   : > { %v717_v17 = vperm.slane %v1873_v16, 0  ;;  %v685_v23 = vperm.slane %v1881_v18, 0  ;;  %s1645_s20 = smov 72   ;;  %v718_v27 = vperm.slane %v1873_v16, 1  ;;  %v686_v31 = vperm.slane %v1881_v18, 1  ;;  %s1646_s21 = smov 73  }
  0x3c   : > { %v1902_v28 = vld [vmem:[#allocation9 + $0x25] ss:$8 sm:$0xf]  ;;  %v1923_v38 = vld [vmem:[#allocation9 + $0x24] ss:$8 sm:$0xf] }
  0x3d   : > { %v654_v36 = vperm.slane %v1902_v28, 1  ;;  %v622_v41 = vperm.slane %v1923_v38, 1  ;;  %v1940_v47 = vld [vmem:[#allocation9 + $0x23] ss:$8 sm:$0xf]  ;;  %s1647_s22 = smov 119  }
  0x3e   : > { %2582 = vst [vmem:[#allocation15_spill] sm:$0xff] %v1940_v47  ;;  %v590_v48 = vperm.slane %v1940_v47, 1  ;;  %v1960_v54 = vld [vmem:[#allocation9 + $0x62] ss:$8 sm:$0xf]  ;;  %vm549_vm6 = vcmp.lt.s32.totalorder %v1871_v15, 9 }
  0x3f   : > { %v232_v3 = vld.sshfl [vmem:[#allocation1 + $0x8] sm:$0xff pattern:$0x75316420]  ;;  %v231_v4 = vld.sshfl [vmem:[#allocation1] sm:$0xff pattern:$0x75316420] }
  0x40   : > { %240 = vst [vmem:[#allocation2] sm:$0xf] %v232_v3  ;;  %v233_v5 = vld.sshfl [vmem:[#allocation1 + $0x10] sm:$0xff pattern:$0x75316420]  ;;  %v953_v56 = vperm.slane %v1960_v54, 1 }
  0x41   : > { %239 = vst [vmem:[#allocation2 + $0x10] sm:$0xf] %v231_v4  ;;  %v234_v8 = vld.sshfl [vmem:[#allocation1 + $0x18] sm:$0xff pattern:$0x75316420]  ;;  %v653_v1 = vperm.slane %v1902_v28, 0 }
  0x42   : > { %241 = vst [vmem:[#allocation2 + $0x18] sm:$0xf] %v233_v5  ;;  %v1962_v55 = vld [vmem:[#allocation9 + $0x21] ss:$8 sm:$0xf]  ;;  %v621_v5 = vperm.slane %v1923_v38, 0 }
  0x43   : > { %242 = vst [vmem:[#allocation2 + $0x8] sm:$0xf] %v234_v8  ;;  %v527_v57 = vperm.slane %v1962_v55, 2  ;;  %v1982_v0 = vld [vmem:[#allocation9 + $0x22] ss:$8 sm:$0xf] }
  0x44   : > { %v558_v2 = vperm.slane %v1982_v0, 1  ;;  %vm485_vm7 = vcmp.lt.s32.totalorder %v1871_v15, 56  ;;  %s1648_s24 = smov 120   ;;  %vm453_vm8 = vcmp.lt.s32.totalorder %v1871_v15, 57  ;;  %vm421_vm9 = vcmp.lt.s32.totalorder %v1871_v15, 63 }
  0x45   : > { %vm389_vm10 = vcmp.lt.s32.totalorder %v1871_v15, 64  ;;  %vm357_vm11 = vcmp.lt.s32.totalorder %v1871_v15, 65  ;;  %vm325_vm12 = vcmp.lt.s32.totalorder %v1871_v15, 71  ;;  %vm293_vm13 = vcmp.lt.s32.totalorder %v1871_v15, 72 }
  0x46   : > { %vm261_vm14 = vcmp.lt.s32.totalorder %v1871_v15, 73  ;;  %vm773_vm15 = vcmp.lt.s32.totalorder %v1871_v15, 119 }
  0x47   : > { %v1777_v6 = vld [vmem:[#allocation2] sm:$0xff] }
  0x48   : > { %671 = vrot.lane.b32.xlu1 %v1777_v6, %s1632_s18  ;;  %703 = vrot.lane.b32.xlu0 %v1777_v6, %s1633_s23  ;;  %v1783_v7 = vld [vmem:[#allocation2 + $0x10] sm:$0xff] }
  0x49   : > { %637 = vrot.lane.b32.xlu2 %v1783_v7, %s1634_s25  ;;  %v1787_v9 = vld [vmem:[#allocation2 + $0x18] sm:$0xff] }
  0x4a   : > { %v1811_v10 = vld [vmem:[#allocation2 + $0x8] sm:$0xff] }
  0x50   : > { %673 = vrot.lane.b32.xlu1 %v1787_v9, %s1632_s18  ;;  %705 = vrot.lane.b32.xlu0 %v1787_v9, %s1633_s23 }
  0x51   : > { %639 = vrot.lane.b32.xlu2 %v1777_v6, %s1634_s25 }
  0x58   : > { %607 = vrot.lane.b32.xlu1 %v1777_v6, %s1635_s26  ;;  %605 = vrot.lane.b32.xlu0 %v1783_v7, %s1635_s26 }
  0x59   : > { %701 = vrot.lane.b32.xlu2 %v1783_v7, %s1633_s23 }
  0x60   : > { %575 = vrot.lane.b32.xlu1 %v1777_v6, %s1636_s27  ;;  %573 = vrot.lane.b32.xlu0 %v1783_v7, %s1636_s27 }
  0x61   : > { %669 = vrot.lane.b32.xlu2 %v1783_v7, %s1632_s18 }
  0x68   : > { %513 = vrot.lane.b32.xlu1 %v1787_v9, %s1637_s28  ;;  %511 = vrot.lane.b32.xlu0 %v1777_v6, %s1637_s28 }
  0x69   : > { %541 = vrot.lane.b32.xlu2 %v1783_v7, %s1638_s29 }
  0x70   : > { %643 = vrot.lane.b32.xlu1 %v1811_v10, %s1634_s25  ;;  %543 = vrot.lane.b32.xlu0 %v1777_v6, %s1638_s29 }
  0x71   : > { %479 = vrot.lane.b32.xlu2 %v1777_v6, %s1639_s30 }
  0x78   : > { %509 = vrot.lane.b32.xlu1 %v1783_v7, %s1637_s28  ;;  %481 = vrot.lane.b32.xlu0 %v1787_v9, %s1639_s30 }
  0x79   : > { %611 = vrot.lane.b32.xlu2 %v1811_v10, %s1635_s26 }
  0x80   : > { %449 = vrot.lane.b32.xlu1 %v1787_v9, %s1640_s4  ;;  %447 = vrot.lane.b32.xlu0 %v1777_v6, %s1640_s4 }
  0x81   : > { %477 = vrot.lane.b32.xlu2 %v1783_v7, %s1639_s30 }
  0x88   : > { %707 = vrot.lane.b32.xlu1 %v1811_v10, %s1633_s23  ;;  %579 = vrot.lane.b32.xlu0 %v1811_v10, %s1636_s27 }
  0x89   : > { %415 = vrot.lane.b32.xlu2 %v1777_v6, %s1641_s5 }
  0x90   : > { %445 = vrot.lane.b32.xlu1 %v1783_v7, %s1640_s4  ;;  %417 = vrot.lane.b32.xlu0 %v1787_v9, %s1641_s5 }
  0x91   : > { %547 = vrot.lane.b32.xlu2 %v1811_v10, %s1638_s29 }
  0x98   : > { %383 = vrot.lane.b32.xlu1 %v1777_v6, %s1642_s7  ;;  %675 = vrot.lane.b32.xlu0 %v1811_v10, %s1632_s18  ;;  %s1364_s18 = sshll.u32 %s1765_s11, 5 }
  0x99   : > { %385 = vrot.lane.b32.xlu2 %v1787_v9, %s1642_s7  ;;  %s219_s23 = scalar_lea.vmem [#allocation10], %s1364_s18 }
  0xa0   : > { %515 = vrot.lane.b32.xlu1 %v1811_v10, %s1637_s28  ;;  %413 = vrot.lane.b32.xlu0 %v1783_v7, %s1641_s5 }
  0xa1   : > { %641 = vrot.lane.b32.xlu2 %v1787_v9, %s1634_s25  ;;  %s1375_s25 = sshll.u32 %s1690_s16, 5 }
  0xa2   : > { %s1258_s28 = scalar_lea.hbm %s2562_s3, %s1375_s25 }
  0xa3   : > { %v1853_v11 = vpop.permute.xlu2 %637 }
  0xa8   : > { %353 = vrot.lane.b32.xlu1 %v1787_v9, %s1643_s8  ;;  %351 = vrot.lane.b32.xlu0 %v1777_v6, %s1643_s8 }
  0xa9   : > { %381 = vrot.lane.b32.xlu2 %v1783_v7, %s1642_s7 }
  0xab   : > { %v1861_v12 = vpop.permute.xlu2 %639 }
  0xac   : > { %v648_v37 = vsel %vm645_vm2, %v1853_v11, %v1861_v12 }
  0xad   : > { %v662_v40 = vmul.f32 %v654_v36, %v648_v37 }
  0xb0   : > { %609 = vrot.lane.b32.xlu1 %v1787_v9, %s1635_s26  ;;  %483 = vrot.lane.b32.xlu0 %v1811_v10, %s1639_s30  ;;  %s1262_s30 = sshll.u32 %s1258_s28, 4  ;;  %s1263_s30 = int_to_ptr.hbm [resolvable:$true] %s1262_s30 }
  0xb1   : > { %319 = vrot.lane.b32.xlu2 %v1777_v6, %s1644_s17 }
  0xb3   : > { %v1869_v14 = vpop.permute.xlu2 %701 }
  0xb8   : > { %349 = vrot.lane.b32.xlu1 %v1783_v7, %s1643_s8  ;;  %321 = vrot.lane.b32.xlu0 %v1787_v9, %s1644_s17 }
  0xb9   : > { %451 = vrot.lane.b32.xlu2 %v1811_v10, %s1640_s4  ;;  %s1247_s4 = scalar_lea.sflag [#allocation6], %s1765_s11 }
  0xba   : > { %v672_v19 = vpop.permute.xlu1 %671  ;;  %v704_v20 = vpop.permute.xlu0 %703 }
  0xbb   : > { %v1886_v21 = vpop.permute.xlu2 %669  ;;  %v712_v22 = vsel %vm709_vm0, %v1869_v14, %v704_v20 }
  0xbc   : > { %v680_v24 = vsel %vm677_vm1, %v1886_v21, %v672_v19  ;;  %v725_v25 = vmul.f32 %v717_v17, %v712_v22 }
  0xbd   : > { %v693_v26 = vmul.f32 %v685_v23, %v680_v24  ;;  %v2012_v24 = vld [vmem:[#allocation9 + $0x61] ss:$8 sm:$0xf] }
  0xbe   : > { %1082 = vmatpush.msra.mxu0 %v725_v25  ;;  %v526_v25 = vperm.slane %v1962_v55, 1 }
  0xc0   : > { %287 = vrot.lane.b32.xlu1 %v1777_v6, %s1645_s20  ;;  %577 = vrot.lane.b32.xlu0 %v1787_v9, %s1636_s27 }
  0xc1   : > { %289 = vrot.lane.b32.xlu2 %v1787_v9, %s1645_s20  ;;  %1083 = vmatpush.msra.mxu0 %v693_v26  ;;  %v934_v26 = vperm.slane %v2012_v24, 1 }
  0xc2   : > { %v1905_v29 = vpop.permute.xlu1 %673  ;;  %v1907_v30 = vpop.permute.xlu0 %705 }
  0xc3   : > { %v679_v32 = vsel %vm677_vm1, %v672_v19, %v1905_v29  ;;  %v1913_v33 = vpop.permute.xlu2 %541  ;;  %v711_v34 = vsel %vm709_vm0, %v704_v20, %v1907_v30 }
  0xc4   : > { %v726_v35 = vmul.f32 %v718_v27, %v711_v34  ;;  %v694_v39 = vmul.f32 %v686_v31, %v679_v32  ;;  %v2019_v27 = vld [vmem:[#allocation9 + $0x20] ss:$8 sm:$0xf] }
  0xc5   : > { %v495_v34 = vperm.slane %v2019_v27, 2 }
  0xc6   : > { %1122 = vmatpush.msra.mxu2 %v726_v35 }
  0xc8   : > { %1123 = vmatpush.msra.mxu2 %v694_v39  ;;  %419 = vrot.lane.b32.xlu1 %v1811_v10, %s1641_s5  ;;  %s1569_s5 = sshra.s32 %s1263_s30, 4  ;;  %s1570_s5 = int_to_ptr.hbm [resolvable:$true] %s1569_s5 }
  0xc9   : > { %317 = vrot.lane.b32.xlu0 %v1783_v7, %s1644_s17  ;;  %545 = vrot.lane.b32.xlu2 %v1787_v9, %s1638_s29  ;;  %s1260_s29 = sshll.u32 %s219_s23, 4  ;;  %s1571_s16 = scalar_lea.hbm %s1570_s5, 32  ;;  %s1261_s29 = int_to_ptr.vmem [resolvable:$true] %s1260_s29 }
  0xca   : > { %v1933_v42 = vpop.permute.xlu1 %607  ;;  %v606_v43 = vpop.permute.xlu0 %605  ;;  %1124 = vmatpush.msra.mxu2 %v662_v40  ;;  %v494_v40 = vperm.slane %v2019_v27, 1  ;;  %p1572_p1 = scmp.ne.s32.totalorder %s1570_s5, %s1571_s16  ;;  %p1576_p9 = scmp.lt.s32.totalorder %s1570_s5, %s2562_s3 }
  0xcb   : > { %2581 = vst [vmem:[#allocation14_spill] sm:$0xff] %v1933_v42  ;;  %v616_v44 = vsel %vm613_vm3, %v606_v43, %v1933_v42  ;;  %v1938_v45 = vpop.permute.xlu2 %479 }
  0xcc   : > { %v630_v46 = vmul.f32 %v622_v41, %v616_v44  ;;  %p1573_p4 = pnand %p1572_p1, %p1738_p5 }
  0xce   : > { %1125 = vmatpush.msra.mxu2 %v630_v46  ;;  %v2045_v46 = vld [vmem:[#allocation9 + $0x60] ss:$8 sm:$0xf]  ;;  %p1574_p8 = pneg %p1573_p4 }
  0xd0   : > { %255 = vrot.lane.b32.xlu1 %v1787_v9, %s1646_s21 }
  0xd1   : > { %253 = vrot.lane.b32.xlu0 %v1777_v6, %s1646_s21  ;;  %285 = vrot.lane.b32.xlu2 %v1783_v7, %s1645_s20 }
  0xd2   : > { %v1950_v49 = vpop.permute.xlu1 %575  ;;  %v1952_v50 = vpop.permute.xlu0 %573 }
  0xd3   : > { %2583 = vst [vmem:[#allocation16_spill] sm:$0xff] %v1950_v49  ;;  %v584_v51 = vsel %vm581_vm4, %v1952_v50, %v1950_v49  ;;  %v1958_v52 = vpop.permute.xlu2 %611 }
  0xd4   : > { %2584 = vst [vmem:[#allocation17_spill] sm:$0xff] %v1958_v52  ;;  %v598_v53 = vmul.f32 %v590_v48, %v584_v51  ;;  %v617_v8 = vsel %vm613_vm3, %v1958_v52, %v606_v43  ;;  %v2047_v51 = vld [vmem:[#allocation9 + $0x7] ss:$8 sm:$0xf] }
  0xd5   : > { %v629_v23 = vmul.f32 %v621_v5, %v617_v8  ;;  %v589_v8 = vperm.slane %v1940_v47, 0 }
  0xd6   : > { %1126 = vmatpush.msra.mxu2 %v598_v53 }
  0xd8   : > { %251 = vrot.lane.b32.xlu1 %v1783_v7, %s1646_s21 }
  0xd9   : > { %387 = vrot.lane.b32.xlu0 %v1811_v10, %s1642_s7  ;;  %355 = vrot.lane.b32.xlu2 %v1811_v10, %s1643_s8 }
  0xda   : > { %v1973_v58 = vpop.permute.xlu1 %513  ;;  %v512_v59 = vpop.permute.xlu0 %511 }
  0xdb   : > { %v1975_v60 = vpop.permute.xlu2 %477  ;;  %v519_v61 = vsel %vm517_vm5, %v512_v59, %v1973_v58 }
  0xdc   : > { %v961_v62 = vmul.f32 %v953_v56, %v519_v61  ;;  %v1980_v63 = vmul.f32 %v527_v57, %v519_v61  ;;  %v488_v35 = vsel %vm485_vm7, %v1975_v60, %v1938_v45  ;;  %v915_v56 = vperm.slane %v2045_v46, 1 }
  0xdd   : > { %v463_v57 = vperm.slane %v2047_v51, 2 }
  0xde   : > { %2585 = vst [vmem:[#allocation18_spill] sm:$0xff] %v1980_v63  ;;  %1147 = vmatpush.msra.mxu3 %v961_v62 }
  0xe0   : > { %769 = vrot.lane.b32.xlu1 %v1787_v9, %s1647_s22 }
  0xe1   : > { %767 = vrot.lane.b32.xlu0 %v1777_v6, %s1647_s22  ;;  %323 = vrot.lane.b32.xlu2 %v1811_v10, %s1644_s17  ;;  %s1575_s17 = scalar_lea.hbm %s2562_s3, 64 }
  0xe2   : > { %v1993_v3 = vpop.permute.xlu1 %643  ;;  %v1995_v4 = vpop.permute.xlu0 %543  ;;  %p1577_p10 = scmp.lt.s32.totalorder %s1575_s17, %s1571_s16 }
  0xe3   : > { %2586 = vst [vmem:[#allocation19_spill] sm:$0xff] %v1995_v4  ;;  %v649_v13 = vsel %vm645_vm2, %v1993_v3, %v1853_v11  ;;  %v552_v17 = vsel %vm549_vm6, %v1913_v33, %v1995_v4  ;;  %v2009_v19 = vpop.permute.xlu2 %415  ;;  %v952_v11 = vperm.slane %v1960_v54, 0 }
  0xe4   : > { %v661_v20 = vmul.f32 %v653_v1, %v649_v13  ;;  %v566_v22 = vmul.f32 %v558_v2, %v552_v17  ;;  %p1578_p2 = por %p1577_p10, %p1576_p9 }
  0xe6   : > { %1084 = vmatpush.msra.mxu0 %v661_v20  ;;  %1127 = vmatpush.msra.mxu2 %v566_v22  ;;  %v557_v20 = vperm.slane %v1982_v0, 0  ;;  %p1579_p11 = pnand %p1578_p2, %p1574_p8 }
  0xe8   : > { %737 = vrot.lane.b32.xlu1 %v1787_v9, %s1648_s24  ;;  %1085 = vmatpush.msra.mxu0 %v629_v23  ;;  %v933_v9 = vperm.slane %v2012_v24, 0 }
  0xe9   : > { %735 = vrot.lane.b32.xlu0 %v1777_v6, %s1648_s24  ;;  %291 = vrot.lane.b32.xlu2 %v1811_v10, %s1645_s20 }
  0xea   : > { %v2025_v31 = vpop.permute.xlu1 %509  ;;  %v2027_v32 = vpop.permute.xlu0 %481  ;;  %v941_v48 = vmul.f32 %v933_v9, %v488_v35 }
  0xeb   : > { %v487_v36 = vsel %vm485_vm7, %v1938_v45, %v2027_v32  ;;  %v2039_v37 = vpop.permute.xlu2 %547  ;;  %v520_v39 = vsel %vm517_vm5, %v2025_v31, %v512_v59  ;;  %v502_v45 = vmul.f32 %v494_v40, %v488_v35 }
  0xec   : > { %2587 = vst [vmem:[#allocation20_spill] sm:$0xff] %v2039_v37  ;;  %v960_v41 = vmul.f32 %v952_v11, %v520_v39  ;;  %v534_v43 = vmul.f32 %v526_v25, %v520_v39  ;;  %v942_v44 = vmul.f32 %v934_v26, %v487_v36  ;;  %v2049_v53 = vmul.f32 %v495_v34, %v487_v36  ;;  %v2103_v26 = vld [vmem:[#allocation9 + $0x47] ss:$8 sm:$0xf] }
  0xed   : > { %v553_v22 = vsel %vm549_vm6, %v2039_v37, %v1913_v33  ;;  %v462_v34 = vperm.slane %v2047_v51, 1  ;;  %v896_v35 = vperm.slane %v2103_v26, 1  ;;  %v897_v52 = vperm.slane %v2103_v26, 2 }
  0xee   : > { %1107 = vmatpush.msra.mxu1 %v960_v41  ;;  %1128 = vmatpush.msra.mxu2 %v534_v43  ;;  %2588 = vst [vmem:[#allocation21_spill] sm:$0xff] %v2049_v53  ;;  %v565_v9 = vmul.f32 %v557_v20, %v553_v22  ;;  %v2141_v22 = vld [vmem:[#allocation9 + $0x5] ss:$8 sm:$0xf] }
  0xef   : > { %1148 = vmatpush.msra.mxu3 %v942_v44  ;;  %v2173_v53 = vld [vmem:[#allocation9 + $0x45] ss:$8 sm:$0xf] }
  0xf0   : > { %765 = vrot.lane.b32.xlu1 %v1783_v7, %s1647_s22  ;;  %1108 = vmatpush.msra.mxu1 %v941_v48 }
  0xf1   : > { %257 = vrot.lane.b32.xlu0 %v1811_v10, %s1646_s21  ;;  %1129 = vmatpush.msra.mxu2 %v502_v45 }
  0xf2   : > { %v2058_v59 = vpop.permute.xlu1 %449  ;;  %v448_v61 = vpop.permute.xlu0 %447  ;;  %733 = vrot.lane.b32.xlu2 %v1783_v7, %s1648_s24 }
  0xf3   : > { %v455_v62 = vsel %vm453_vm8, %v448_v61, %v2058_v59  ;;  %v2065_v1 = vpop.permute.xlu2 %385 }
  0xf4   : > { %v923_v2 = vmul.f32 %v915_v56, %v455_v62  ;;  %v2067_v5 = vmul.f32 %v463_v57, %v455_v62  ;;  %v2125_v56 = vld [vmem:[#allocation9 + $0x46] ss:$8 sm:$0xf] }
  0xf6   : > { %2589 = vst [vmem:[#allocation22_spill] sm:$0xff] %v2067_v5  ;;  %1149 = vmatpush.msra.mxu3 %v923_v2 }
  0xf8   : > { %739 = vrot.lane.b32.xlu1 %v1811_v10, %s1648_s24 }
  0xf9   : > { %771 = vrot.lane.b32.xlu0 %v1811_v10, %s1647_s22 }
  0xfa   : > { %v708_v13 = vpop.permute.xlu1 %707  ;;  %v2074_v17 = vpop.permute.xlu0 %579 }
  0xfb   : > { %2590 = vst [vmem:[#allocation23_spill] sm:$0xff] %v2074_v17  ;;  %v2084_v23 = vsel %vm709_vm0, %v1907_v30, %v708_v13  ;;  %v2089_v11 = vsel %vm709_vm0, %v708_v13, %v1869_v14  ;;  %v585_v10 = vsel %vm581_vm4, %v2074_v17, %v1952_v50  ;;  %v2095_v25 = vpop.permute.xlu2 %641  ;;  %v2105_v14 = vld [vmem:[#allocation9 + $0x6] ss:$8 sm:$0xf]  ;;  %v914_v50 = vperm.slane %v2045_v46, 0 }
  0xfc   : > { %v2101_v33 = vsel %vm645_vm2, %v2095_v25, %v1993_v3  ;;  %v597_v30 = vmul.f32 %v589_v8, %v585_v10  ;;  %v431_v39 = vperm.slane %v2105_v14, 2  ;;  %v525_v10 = vperm.slane %v1962_v55, 0 }
  0xfd   : > { %vm741_vm0 = vcmp.lt.s32.totalorder %v1871_v15, 120  ;;  %v2618_v15 = vld [vmem:[#allocation18_spill] sm:$0xff] }
  0xfe   : > { %1086 = vmatpush.msra.mxu0 %v597_v30  ;;  %v895_v30 = vperm.slane %v2103_v26, 0 }
 0x100   : > { %1087 = vmatpush.msra.mxu0 %v565_v9  ;;  %v430_v9 = vperm.slane %v2105_v14, 1 }
 0x102   : > { %v2111_v36 = vpop.permute.xlu1 %445  ;;  %v2113_v3 = vpop.permute.xlu0 %417 }
 0x103   : > { %v456_v40 = vsel %vm453_vm8, %v2111_v36, %v448_v61  ;;  %v423_v41 = vsel %vm421_vm9, %v2009_v19, %v2113_v3  ;;  %v2123_v43 = vpop.permute.xlu2 %381  ;;  %v877_v61 = vperm.slane %v2125_v56, 1 }
 0x104   : > { %v922_v44 = vmul.f32 %v914_v50, %v456_v40  ;;  %v470_v48 = vmul.f32 %v462_v34, %v456_v40  ;;  %v904_v45 = vmul.f32 %v896_v35, %v423_v41  ;;  %v2127_v57 = vmul.f32 %v431_v39, %v423_v41 }
 0x105   : > { %v876_v50 = vperm.slane %v2125_v56, 0  ;;  %v398_v39 = vperm.slane %v2141_v22, 1  ;;  %v954_v40 = vperm.slane %v1960_v54, 2  ;;  %v916_v41 = vperm.slane %v2045_v46, 2 }
 0x106   : > { %1109 = vmatpush.msra.mxu1 %v922_v44  ;;  %1130 = vmatpush.msra.mxu2 %v470_v48  ;;  %2591 = vst [vmem:[#allocation24_spill] sm:$0xff] %v2127_v57  ;;  %v528_v44 = vperm.slane %v1962_v55, 3 }
 0x107   : > { %1150 = vmatpush.msra.mxu3 %v904_v45 }
 0x10a   : > { %v384_v62 = vpop.permute.xlu1 %383  ;;  %v2131_v2 = vpop.permute.xlu0 %675 }
 0x10b   : > { %v2136_v8 = vsel %vm389_vm10, %v384_v62, %v2065_v1  ;;  %v2138_v13 = vpop.permute.xlu2 %319  ;;  %v392_v48 = vsel %vm389_vm10, %v2123_v43, %v384_v62 }
 0x10c   : > { %2592 = vst [vmem:[#allocation25_spill] sm:$0xff] %v2136_v8  ;;  %v885_v20 = vmul.f32 %v877_v61, %v2136_v8 }
 0x10e   : > { %1151 = vmatpush.msra.mxu3 %v885_v20 }
 0x112   : > { %v516_v34 = vpop.permute.xlu1 %515  ;;  %v2147_v35 = vpop.permute.xlu0 %413 }
 0x113   : > { %v518_v45 = vsel %vm517_vm5, %v1973_v58, %v516_v34  ;;  %v2162_v61 = vsel %vm517_vm5, %v516_v34, %v2025_v31  ;;  %v424_v20 = vsel %vm421_vm9, %v2147_v35, %v2009_v19  ;;  %v452_v8 = vpop.permute.xlu2 %451  ;;  %v464_v58 = vperm.slane %v2047_v51, 3  ;;  %v2175_v34 = vld [vmem:[#allocation9 + $0x4] ss:$8 sm:$0xf] }
 0x114   : > { %v454_v55 = vsel %vm453_vm8, %v2058_v59, %v452_v8  ;;  %v533_v62 = vmul.f32 %v525_v10, %v2162_v61  ;;  %v903_v57 = vmul.f32 %v895_v30, %v424_v20  ;;  %v438_v5 = vmul.f32 %v430_v9, %v424_v20 }
 0x115   : > { %v884_v31 = vmul.f32 %v876_v50, %v392_v48  ;;  %v406_v19 = vmul.f32 %v398_v39, %v392_v48  ;;  %v2177_v63 = vmul.f32 %v954_v40, %v518_v45  ;;  %v2179_v4 = vmul.f32 %v916_v41, %v454_v55 }
 0x116   : > { %1088 = vmatpush.msra.mxu0 %v533_v62  ;;  %1110 = vmatpush.msra.mxu1 %v903_v57  ;;  %v858_v59 = vperm.slane %v2173_v53, 1  ;;  %v2183_v10 = vmul.f32 %v528_v44, %v518_v45  ;;  %v2185_v30 = vmul.f32 %v464_v58, %v454_v55  ;;  %v367_v57 = vperm.slane %v2175_v34, 2 }
 0x117   : > { %1131 = vmatpush.msra.mxu2 %v438_v5  ;;  %v493_v48 = vperm.slane %v2019_v27, 0  ;;  %v935_v44 = vperm.slane %v2012_v24, 2  ;;  %v461_v55 = vperm.slane %v2047_v51, 0  ;;  %v2202_v62 = vsel %vm453_vm8, %v452_v8, %v2111_v36  ;;  %v2221_v8 = vld [vmem:[#allocation9 + $0x3] ss:$8 sm:$0xf] }
 0x118   : > { %1111 = vmatpush.msra.mxu1 %v884_v31  ;;  %2593 = vst [vmem:[#allocation26_spill] sm:$0xff] %v2183_v10  ;;  %v2249_v10 = vld [vmem:[#allocation9 + $0x2] ss:$8 sm:$0xf]  ;;  %v334_v37 = vperm.slane %v2221_v8, 1  ;;  %vm1078_vm5 = vcmask 719872  }
 0x119   : > { %2594 = vst [vmem:[#allocation27_spill] sm:$0xff] %v2185_v30  ;;  %1132 = vmatpush.msra.mxu2 %v406_v19  ;;  %v469_v36 = vmul.f32 %v461_v55, %v2202_v62  ;;  %v2243_v30 = vld [vmem:[#allocation9 + $0x43] ss:$8 sm:$0xf] }
 0x11a   : > { %v354_v9 = vpop.permute.xlu1 %353  ;;  %v352_v50 = vpop.permute.xlu0 %351 }
 0x11b   : > { %v359_v5 = vsel %vm357_vm11, %v352_v50, %v354_v9  ;;  %v2190_v39 = vpop.permute.xlu2 %289 }
 0x11c   : > { %v866_v40 = vmul.f32 %v858_v59, %v359_v5  ;;  %v2192_v41 = vmul.f32 %v367_v57, %v359_v5  ;;  %v496_v59 = vperm.slane %v2019_v27, 3  ;;  %v2216_v57 = vld [vmem:[#allocation9 + $0x44] ss:$8 sm:$0xf]  ;;  %v366_v27 = vperm.slane %v2175_v34, 1 }
 0x11e   : > { %2595 = vst [vmem:[#allocation28_spill] sm:$0xff] %v2192_v41  ;;  %1152 = vmatpush.msra.mxu3 %v866_v40  ;;  %v839_v40 = vperm.slane %v2216_v57, 1 }
 0x122   : > { %v2196_v45 = vpop.permute.xlu1 %609  ;;  %v484_v20 = vpop.permute.xlu0 %483 }
 0x123   : > { %2596 = vst [vmem:[#allocation29_spill] sm:$0xff] %v2196_v45  ;;  %v486_v58 = vsel %vm485_vm7, %v2027_v32, %v484_v20  ;;  %v2210_v31 = vsel %vm485_vm7, %v484_v20, %v1975_v60  ;;  %v2212_v19 = vpop.permute.xlu2 %545  ;;  %v857_v60 = vperm.slane %v2173_v53, 0  ;;  %v819_v45 = vperm.slane %v2243_v30, 0 }
 0x124   : > { %2597 = vst [vmem:[#allocation30_spill] sm:$0xff] %v2212_v19  ;;  %v501_v51 = vmul.f32 %v493_v48, %v2210_v31  ;;  %v2218_v5 = vmul.f32 %v935_v44, %v486_v58  ;;  %v2223_v32 = vmul.f32 %v496_v59, %v486_v58  ;;  %v335_v48 = vperm.slane %v2221_v8, 2 }
 0x125   : > { %v838_v19 = vperm.slane %v2216_v57, 0 }
 0x126   : > { %1089 = vmatpush.msra.mxu0 %v501_v51  ;;  %2598 = vst [vmem:[#allocation31_spill] sm:$0xff] %v2223_v32 }
 0x128   : > { %1090 = vmatpush.msra.mxu0 %v469_v36 }
 0x12a   : > { %v2230_v44 = vpop.permute.xlu1 %349  ;;  %v2232_v20 = vpop.permute.xlu0 %321 }
 0x12b   : > { %v360_v55 = vsel %vm357_vm11, %v2230_v44, %v352_v50  ;;  %v327_v58 = vsel %vm325_vm12, %v2138_v13, %v2232_v20  ;;  %v2241_v59 = vpop.permute.xlu2 %285  ;;  %v820_v50 = vperm.slane %v2243_v30, 1 }
 0x12c   : > { %v865_v51 = vmul.f32 %v857_v60, %v360_v55  ;;  %v374_v36 = vmul.f32 %v366_v27, %v360_v55  ;;  %v847_v41 = vmul.f32 %v839_v40, %v327_v58  ;;  %v2245_v32 = vmul.f32 %v335_v48, %v327_v58 }
 0x12d   : > { %v859_v60 = vperm.slane %v2173_v53, 2  ;;  %v368_v27 = vperm.slane %v2175_v34, 3 }
 0x12e   : > { %2599 = vst [vmem:[#allocation32_spill] sm:$0xff] %v2245_v32  ;;  %1112 = vmatpush.msra.mxu1 %v865_v51  ;;  %1133 = vmatpush.msra.mxu2 %v374_v36 }
 0x12f   : > { %1153 = vmatpush.msra.mxu3 %v847_v41  ;;  %v303_v41 = vperm.slane %v2249_v10, 2 }
 0x132   : > { %v288_v17 = vpop.permute.xlu1 %287  ;;  %v2251_v49 = vpop.permute.xlu0 %577 }
 0x133   : > { %2600 = vst [vmem:[#allocation33_spill] sm:$0xff] %v2251_v49  ;;  %v295_v40 = vsel %vm293_vm13, %v288_v17, %v2190_v39  ;;  %v356_v48 = vpop.permute.xlu2 %355  ;;  %v429_v49 = vperm.slane %v2105_v14, 0 }
 0x134   : > { %v358_v55 = vsel %vm357_vm11, %v354_v9, %v356_v48  ;;  %v828_v58 = vmul.f32 %v820_v50, %v295_v40  ;;  %v2265_v32 = vmul.f32 %v303_v41, %v295_v40  ;;  %v302_v40 = vperm.slane %v2249_v10, 1 }
 0x135   : > { %v2261_v51 = vmul.f32 %v859_v60, %v358_v55  ;;  %v2263_v36 = vmul.f32 %v368_v27, %v358_v55  ;;  %v432_v41 = vperm.slane %v2105_v14, 3  ;;  %v296_v55 = vsel %vm293_vm13, %v2241_v59, %v288_v17 }
 0x136   : > { %1154 = vmatpush.msra.mxu3 %v828_v58  ;;  %2603 = vst [vmem:[#allocation36_spill] sm:$0xff] %v2265_v32  ;;  %v827_v14 = vmul.f32 %v819_v45, %v296_v55 }
 0x137   : > { %2601 = vst [vmem:[#allocation34_spill] sm:$0xff] %v2261_v51  ;;  %v310_v51 = vmul.f32 %v302_v40, %v296_v55  ;;  %v397_v55 = vperm.slane %v2141_v22, 0 }
 0x138   : > { %2602 = vst [vmem:[#allocation35_spill] sm:$0xff] %v2263_v36 }
 0x13a   : > { %v420_v42 = vpop.permute.xlu1 %419 }
 0x13b   : > { %v422_v9 = vsel %vm421_vm9, %v2113_v3, %v420_v42  ;;  %v2278_v50 = vsel %vm421_vm9, %v420_v42, %v2147_v35  ;;  %v318_v60 = vpop.permute.xlu0 %317  ;;  %v2280_v27 = vpop.permute.xlu2 %323  ;;  %v2291_v35 = vld [vmem:[#allocation9 + $0x42] ss:$8 sm:$0xf] }
 0x13c   : > { %v328_v3 = vsel %vm325_vm12, %v318_v60, %v2138_v13  ;;  %v437_v58 = vmul.f32 %v429_v49, %v2278_v50  ;;  %v2293_v36 = vmul.f32 %v897_v52, %v422_v9  ;;  %v2295_v47 = vmul.f32 %v432_v41, %v422_v9 }
 0x13d   : > { %v846_v32 = vmul.f32 %v838_v19, %v328_v3  ;;  %v342_v42 = vmul.f32 %v334_v37, %v328_v3  ;;  %v801_v17 = vperm.slane %v2291_v35, 1  ;;  %v304_v19 = vperm.slane %v2249_v10, 3 }
 0x13e   : > { %1091 = vmatpush.msra.mxu0 %v437_v58  ;;  %2604 = vst [vmem:[#allocation37_spill] sm:$0xff] %v2295_v47  ;;  %v800_v40 = vperm.slane %v2291_v35, 0  ;;  %v936_v47 = vperm.slane %v2012_v24, 3 }
 0x13f   : > { %1113 = vmatpush.msra.mxu1 %v846_v32  ;;  %1134 = vmatpush.msra.mxu2 %v342_v42  ;;  %v365_v42 = vperm.slane %v2175_v34, 0  ;;  %v2342_v34 = vld [vmem:[#allocation9 + $0x41] ss:$8 sm:$0xf] }
 0x141   : > { %1114 = vmatpush.msra.mxu1 %v827_v14  ;;  %1135 = vmatpush.msra.mxu2 %v310_v51  ;;  %v2313_v51 = vld [vmem:[#allocation9 + $0x1] ss:$8 sm:$0xf]  ;;  %v955_v14 = vperm.slane %v1960_v54, 3  ;;  %v329_v54 = vsel %vm325_vm12, %v2280_v27, %v318_v60  ;;  %v898_v60 = vperm.slane %v2103_v26, 3 }
 0x142   : > { %v2299_v49 = vpop.permute.xlu1 %255  ;;  %v270_v41 = vperm.slane %v2313_v51, 1 }
 0x143   : > { %v254_v37 = vpop.permute.xlu0 %253  ;;  %v292_v13 = vpop.permute.xlu2 %291 }
 0x144   : > { %v2305_v52 = vsel %vm261_vm14, %v254_v37, %v2299_v49  ;;  %v2310_v45 = vsel %vm293_vm13, %v2190_v39, %v292_v13  ;;  %v297_v24 = vsel %vm293_vm13, %v292_v13, %v2241_v59 }
 0x145   : > { %2605 = vst [vmem:[#allocation38_spill] sm:$0xff] %v2305_v52  ;;  %v809_v32 = vmul.f32 %v801_v17, %v2305_v52  ;;  %v2316_v9 = vmul.f32 %v304_v19, %v2310_v45  ;;  %v361_v17 = vsel %vm357_vm11, %v356_v48, %v2230_v44  ;;  %v963_v48 = vmul.f32 %v955_v14, %v2162_v61 }
 0x146   : > { %v373_v44 = vmul.f32 %v365_v42, %v361_v17  ;;  %v782_v61 = vperm.slane %v2342_v34, 1 }
 0x147   : > { %1155 = vmatpush.msra.mxu3 %v809_v32  ;;  %2606 = vst [vmem:[#allocation39_spill] sm:$0xff] %v2316_v9 }
 0x14a   : > { %v2321_v3 = vpop.permute.xlu1 %251 }
 0x14b   : > { %v264_v39 = vsel %vm261_vm14, %v2321_v3, %v254_v37  ;;  %v2326_v58 = vpop.permute.xlu0 %387  ;;  %v333_v37 = vperm.slane %v2221_v8, 0 }
 0x14c   : > { %v393_v19 = vsel %vm389_vm10, %v2326_v58, %v2123_v43  ;;  %v808_v32 = vmul.f32 %v800_v40, %v264_v39  ;;  %v278_v9 = vmul.f32 %v270_v41, %v264_v39  ;;  %v301_v43 = vperm.slane %v2249_v10, 0 }
 0x14d   : > { %v405_v52 = vmul.f32 %v397_v55, %v393_v19  ;;  %v917_v40 = vperm.slane %v2045_v46, 3  ;;  %v2364_v55 = vld [vmem:[#allocation9 + $0x40] ss:$8 sm:$0xf] }
 0x14e   : > { %1115 = vmatpush.msra.mxu1 %v808_v32  ;;  %1136 = vmatpush.msra.mxu2 %v278_v9  ;;  %v944_v9 = vmul.f32 %v936_v47, %v2210_v31  ;;  %v309_v41 = vmul.f32 %v301_v43, %v297_v24  ;;  %v906_v47 = vmul.f32 %v898_v60, %v2278_v50  ;;  %v860_v31 = vperm.slane %v2173_v53, 3  ;;  %v2372_v50 = vld [vmem:[#allocation7] sm:$0xff]  ;;  %v2378_v43 = vld [vmem:[#allocation7 + $0x8] sm:$0xff] }
 0x14f   : > { %1092 = vmatpush.msra.mxu0 %v405_v52  ;;  %v341_v52 = vmul.f32 %v333_v37, %v329_v54  ;;  %v925_v59 = vmul.f32 %v917_v40, %v2202_v62  ;;  %v841_v62 = vperm.slane %v2216_v57, 3  ;;  %v750_v14 = vperm.slane %v2364_v55, 1  ;;  %v2380_v40 = vpop.permute.xlu2 %733 }
 0x150   : > { %1137 = vmatpush.msra.mxu2 %v1777_v6  ;;  %v879_v6 = vperm.slane %v2125_v56, 3  ;;  %v868_v42 = vmul.f32 %v860_v31, %v361_v17  ;;  %v822_v32 = vperm.slane %v2243_v30, 3  ;;  %v719_v60 = vperm.slane %v1873_v16, 2 }
 0x151   : > { %1093 = vmatpush.msra.mxu0 %v373_v44  ;;  %v849_v44 = vmul.f32 %v841_v62, %v329_v54  ;;  %1138 = vmatmul.f32.vlgmr.msra.gmra.mxu2 %v2372_v50  ;;  %v781_v54 = vperm.slane %v2342_v34, 0  ;;  %v678_v31 = vsel %vm677_vm1, %v1905_v29, %v2131_v2  ;;  %v2433_v29 = vsel %vm325_vm12, %v2232_v20, %v2280_v27 }
 0x152   : > { %1227 = vmatpush.msrb.mxu2 %v963_v48  ;;  %v2355_v10 = vpop.permute.xlu1 %769  ;;  %v887_v39 = vmul.f32 %v879_v6, %v393_v19  ;;  %v830_v17 = vmul.f32 %v822_v32, %v297_v24  ;;  %v655_v24 = vperm.slane %v1902_v28, 2  ;;  %v749_v6 = vperm.slane %v2364_v55, 0 }
 0x153   : > { %v768_v46 = vpop.permute.xlu0 %767  ;;  %1094 = vmatpush.msra.mxu0 %v341_v52  ;;  %v720_v52 = vperm.slane %v1873_v16, 3  ;;  %v878_v16 = vperm.slane %v2125_v56, 2  ;;  %v688_v56 = vperm.slane %v1881_v18, 3  ;;  %v784_v27 = vperm.slane %v2342_v34, 3 }
 0x154   : > { %1228 = vmatpush.msrb.mxu2 %v944_v9  ;;  %v775_v26 = vsel %vm773_vm15, %v768_v46, %v2355_v10  ;;  %v269_v9 = vperm.slane %v2313_v51, 0 }
 0x155   : > { %1095 = vmatpush.msra.mxu0 %v309_v41  ;;  %v790_v13 = vmul.f32 %v782_v61, %v775_v26  ;;  %v803_v61 = vperm.slane %v2291_v35, 3  ;;  %v656_v41 = vperm.slane %v1902_v28, 3  ;;  %v687_v26 = vperm.slane %v1881_v18, 2 }
 0x156   : > { %1229 = vmatpush.msrb.mxu2 %v925_v59  ;;  %v2404_v28 = vsel %vm389_vm10, %v2065_v1, %v2326_v58  ;;  %v727_v1 = vmul.f32 %v719_v60, %v2084_v23  ;;  %v728_v58 = vmul.f32 %v720_v52, %v2089_v11  ;;  %v681_v18 = vsel %vm677_vm1, %v2131_v2, %v1886_v21  ;;  %v2612_v60 = vld [vmem:[#allocation20_spill] sm:$0xff]  ;;  %v2613_v52 = vld [vmem:[#allocation30_spill] sm:$0xff] }
 0x157   : > { %1156 = vmatpush.msra.mxu3 %v790_v13  ;;  %v840_v11 = vperm.slane %v2216_v57, 2  ;;  %v623_v21 = vperm.slane %v1923_v38, 2  ;;  %v624_v2 = vperm.slane %v1923_v38, 3  ;;  %v559_v57 = vperm.slane %v1982_v0, 2  ;;  %v2608_v38 = vld [vmem:[#allocation17_spill] sm:$0xff] }
 0x158   : > { %1230 = vmatpush.msrb.mxu2 %v906_v47  ;;  %v696_v20 = vmul.f32 %v688_v56, %v681_v18 }
 0x15a   : > { %1231 = vmatpush.msrb.mxu2 %v887_v39  ;;  %v2370_v37 = vpop.permute.xlu1 %737 }
 0x15b   : > { %v736_v53 = vpop.permute.xlu0 %735 }
 0x15c   : > { %1232 = vmatpush.msrb.mxu2 %v868_v42  ;;  %v743_v19 = vsel %vm741_vm0, %v736_v53, %v2370_v37  ;;  %v744_v13 = vsel %vm741_vm0, %v2380_v40, %v736_v53  ;;  %v821_v42 = vperm.slane %v2243_v30, 2  ;;  %v2610_v30 = vld [vmem:[#allocation14_spill] sm:$0xff] }
 0x15d   : > { %v758_v48 = vmul.f32 %v750_v14, %v743_v19  ;;  %v757_v23 = vmul.f32 %v749_v6, %v744_v13  ;;  %v560_v14 = vperm.slane %v1982_v0, 3  ;;  %v752_v6 = vperm.slane %v2364_v55, 3 }
 0x15e   : > { %1233 = vmatpush.msrb.mxu2 %v849_v44  ;;  %v2609_v44 = vld [vmem:[#allocation29_spill] sm:$0xff]  ;;  %v829_v13 = vmul.f32 %v821_v42, %v2310_v45 }
 0x15f   : > { %1157 = vmatpush.msra.mxu3 %v758_v48  ;;  %v614_v19 = vsel %vm613_vm3, %v2609_v44, %v2608_v38  ;;  %v615_v0 = vsel %vm613_vm3, %v2610_v30, %v2609_v44  ;;  %v2611_v48 = vld [vmem:[#allocation34_spill] sm:$0xff]  ;;  %v2625_v42 = vld [vmem:[#allocation25_spill] sm:$0xff]  ;;  %v2629_v38 = vld [vmem:[#allocation32_spill] sm:$0xff] }
 0x160   : > { %1234 = vmatpush.msrb.mxu2 %v830_v17  ;;  %1366 = vmatmul.msk.f32.vlgmr.msra.gmra.mxu3 %vm1078_vm5, %v2378_v43  ;;  %v848_v17 = vmul.f32 %v840_v11, %v2433_v29  ;;  %v2621_v11 = vld [vmem:[#allocation31_spill] sm:$0xff]  ;;  %v2630_v44 = vld [vmem:[#allocation36_spill] sm:$0xff] }
 0x161   : > { %1187 = vmatpush.msrb.mxu3 %v2177_v63  ;;  %v647_v63 = vsel %vm645_vm2, %v1861_v12, %v2095_v25 }
 0x162   : > { %v766_v59 = vpop.permute.xlu1 %765  ;;  %v663_v62 = vmul.f32 %v655_v24, %v647_v63  ;;  %v2615_v24 = vld [vmem:[#allocation16_spill] sm:$0xff] }
 0x163   : > { %1188 = vmatpush.msrb.mxu3 %v2218_v5  ;;  %v776_v12 = vsel %vm773_vm15, %v766_v59, %v768_v46  ;;  %v258_v25 = vpop.permute.xlu0 %257 }
 0x164   : > { %v265_v5 = vsel %vm261_vm14, %v258_v25, %v2321_v3  ;;  %v789_v47 = vmul.f32 %v781_v54, %v776_v12  ;;  %v664_v3 = vmul.f32 %v656_v41, %v2101_v33  ;;  %v2607_v33 = vld [vmem:[#allocation15_spill] sm:$0xff]  ;;  %v802_v54 = vperm.slane %v2291_v35, 2 }
 0x165   : > { %1189 = vmatpush.msrb.mxu3 %v2179_v4  ;;  %v277_v46 = vmul.f32 %v269_v9, %v265_v5  ;;  %v811_v39 = vmul.f32 %v803_v61, %v265_v5  ;;  %v886_v4 = vmul.f32 %v878_v16, %v2404_v28  ;;  %v591_v32 = vperm.slane %v2607_v33, 2  ;;  %v2614_v61 = vld [vmem:[#allocation33_spill] sm:$0xff]  ;;  %v2616_v12 = vld [vmem:[#allocation23_spill] sm:$0xff] }
 0x166   : > { %1116 = vmatpush.msra.mxu1 %v789_v47  ;;  %v592_v53 = vperm.slane %v2607_v33, 3  ;;  %v550_v9 = vsel %vm549_vm6, %v2613_v52, %v2612_v60  ;;  %v583_v41 = vsel %vm581_vm4, %v2615_v24, %v2614_v61  ;;  %v2467_v63 = vsel %vm261_vm14, %v2299_v49, %v258_v25  ;;  %v2628_v33 = vld [vmem:[#allocation35_spill] sm:$0xff] }
 0x167   : > { %1190 = vmatpush.msrb.mxu3 %v2293_v36  ;;  %1096 = vmatpush.msra.mxu0 %v277_v46  ;;  %v695_v36 = vmul.f32 %v687_v26, %v678_v31  ;;  %v783_v49 = vperm.slane %v2342_v34, 2  ;;  %v582_v25 = vsel %vm581_vm4, %v2614_v61, %v2616_v12  ;;  %v631_v5 = vmul.f32 %v623_v21, %v615_v0  ;;  %v2622_v21 = vld [vmem:[#allocation22_spill] sm:$0xff]  ;;  %v1463_v0 = vld [vmem:[#allocation2 + $0x18] sm:$0xff] }
 0x168   : > { %1235 = vmatpush.msrb.mxu2 %v811_v39  ;;  %1117 = vmatpush.msra.mxu1 %v757_v23  ;;  %v810_v45 = vmul.f32 %v802_v54, %v2467_v63  ;;  %v632_v34 = vmul.f32 %v624_v2, %v614_v19  ;;  %v599_v31 = vmul.f32 %v591_v32, %v583_v41  ;;  %v399_v23 = vperm.slane %v2141_v22, 2  ;;  %v2623_v2 = vld [vmem:[#allocation27_spill] sm:$0xff] }
 0x169   : > { %1191 = vmatpush.msrb.mxu3 %v886_v4  ;;  %1097 = vmatpush.msra.mxu0 %v1783_v7  ;;  %v600_v39 = vmul.f32 %v592_v53, %v582_v25  ;;  %v568_v4 = vmul.f32 %v560_v14, %v550_v9  ;;  %v2626_v14 = vld [vmem:[#allocation37_spill] sm:$0xff]  ;;  %v272_v53 = vperm.slane %v2313_v51, 3  ;;  %v2632_v19 = vld [vmem:[#allocation39_spill] sm:$0xff] }
 0x16a   : > { %1162 = vmatpush.msrb.mxu1 %v727_v1  ;;  %v740_v7 = vpop.permute.xlu1 %739  ;;  %1098 = vmatmul.f32.vlgmr.msra.gmra.mxu0 %v2372_v50  ;;  %v751_v1 = vperm.slane %v2364_v55, 2  ;;  %v2619_v55 = vld [vmem:[#allocation26_spill] sm:$0xff] }
 0x16b   : > { %1192 = vmatpush.msrb.mxu3 %v2611_v48  ;;  %1202 = vmatpush.msrb.mxu0 %v728_v58  ;;  %v772_v16 = vpop.permute.xlu0 %771  ;;  %v745_v35 = vsel %vm741_vm0, %v740_v7, %v2380_v40  ;;  %v742_v58 = vsel %vm741_vm0, %v2370_v37, %v740_v7  ;;  %v2620_v37 = vld [vmem:[#allocation21_spill] sm:$0xff]  ;;  %v280_v30 = vmul.f32 %v272_v53, %v2467_v63 }
 0x16c   : > { %1163 = vmatpush.msrb.mxu1 %v695_v36  ;;  %v777_v26 = vsel %vm773_vm15, %v772_v16, %v766_v59  ;;  %v774_v56 = vsel %vm773_vm15, %v2355_v10, %v772_v16  ;;  %v2617_v59 = vld [vmem:[#allocation19_spill] sm:$0xff]  ;;  %v760_v10 = vmul.f32 %v752_v6, %v745_v35  ;;  %v759_v18 = vmul.f32 %v751_v1, %v742_v58  ;;  %v2624_v36 = vld [vmem:[#allocation24_spill] sm:$0xff] }
 0x16d   : > { %1193 = vmatpush.msrb.mxu3 %v848_v17  ;;  %1203 = vmatpush.msrb.mxu0 %v696_v20  ;;  %v792_v40 = vmul.f32 %v784_v27, %v777_v26  ;;  %v551_v47 = vsel %vm549_vm6, %v2617_v59, %v2613_v52  ;;  %v791_v46 = vmul.f32 %v783_v49, %v774_v56  ;;  %v336_v20 = vperm.slane %v2221_v8, 3  ;;  %v2627_v27 = vld [vmem:[#allocation28_spill] sm:$0xff] }
 0x16e   : > { %1164 = vmatpush.msrb.mxu1 %v663_v62  ;;  %v567_v62 = vmul.f32 %v559_v57, %v551_v47  ;;  %v407_v57 = vmul.f32 %v399_v23, %v2625_v42 }
 0x16f   : > { %1194 = vmatpush.msrb.mxu3 %v829_v13  ;;  %1204 = vmatpush.msrb.mxu0 %v664_v3  ;;  %v400_v3 = vperm.slane %v2141_v22, 3  ;;  %v271_v22 = vperm.slane %v2313_v51, 2  ;;  %v344_v32 = vmul.f32 %v336_v20, %v2433_v29  ;;  %v1464_v29 = vld [vmem:[#allocation2 + $0x8] sm:$0xff] }
 0x170   : > { %1236 = vmatpush.msrb.mxu2 %v792_v40  ;;  %1165 = vmatpush.msrb.mxu1 %v631_v5 }
 0x171   : > { %1195 = vmatpush.msrb.mxu3 %v810_v45  ;;  %1205 = vmatpush.msrb.mxu0 %v632_v34 }
 0x172   : > { %1237 = vmatpush.msrb.mxu2 %v760_v10  ;;  %1166 = vmatpush.msrb.mxu1 %v599_v31 }
 0x173   : > { %1196 = vmatpush.msrb.mxu3 %v791_v46  ;;  %1206 = vmatpush.msrb.mxu0 %v600_v39 }
 0x174   : > { %1167 = vmatpush.msrb.mxu1 %v567_v62  ;;  %1368 = vmatmul.msk.f32.vlgmr.msrb.gmra.mxu2 %vm1078_vm5, %v2378_v43 }
 0x175   : > { %1197 = vmatpush.msrb.mxu3 %v759_v18  ;;  %1207 = vmatpush.msrb.mxu0 %v568_v4 }
 0x176   : > { %1168 = vmatpush.msrb.mxu1 %v2618_v15  ;;  %1367 = vmatmul.msk.f32.vlgmr.msrb.gmra.mxu3 %vm1078_vm5, %v2378_v43 }
 0x177   : > { %1208 = vmatpush.msrb.mxu0 %v2619_v55  ;;  %1365 = vmatmul.msk.f32.vlgmr.msra.gmra.mxu1 %vm1078_vm5, %v2378_v43  ;;  %v408_v43 = vmul.f32 %v400_v3, %v2404_v28  ;;  %v2631_v28 = vld [vmem:[#allocation38_spill] sm:$0xff] }
 0x178   : > { %1169 = vmatpush.msrb.mxu1 %v2620_v37  ;;  %v279_v8 = vmul.f32 %v271_v22, %v2631_v28 }
 0x179   : > { %1209 = vmatpush.msrb.mxu0 %v2621_v11 }
 0x17a   : > { %1170 = vmatpush.msrb.mxu1 %v2622_v21 }
 0x17b   : > { %1210 = vmatpush.msrb.mxu0 %v2623_v2 }
 0x17c   : > { %1171 = vmatpush.msrb.mxu1 %v2624_v36 }
 0x17d   : > { %1211 = vmatpush.msrb.mxu0 %v2626_v14 }
 0x17e   : > { %1172 = vmatpush.msrb.mxu1 %v407_v57 }
 0x17f   : > { %1212 = vmatpush.msrb.mxu0 %v408_v43 }
 0x180   : > { %1173 = vmatpush.msrb.mxu1 %v2627_v27 }
 0x181   : > { %1213 = vmatpush.msrb.mxu0 %v2628_v33 }
 0x182   : > { %1174 = vmatpush.msrb.mxu1 %v2629_v38 }
 0x183   : > { %1214 = vmatpush.msrb.mxu0 %v344_v32 }
 0x184   : > { %1175 = vmatpush.msrb.mxu1 %v2630_v44 }
 0x185   : > { %1215 = vmatpush.msrb.mxu0 %v2632_v19 }
 0x186   : > { %1176 = vmatpush.msrb.mxu1 %v279_v8 }
 0x187   : > { %1216 = vmatpush.msrb.mxu0 %v280_v30 }
 0x188   : > { %1177 = vmatpush.msrb.mxu1 %v1463_v0 }
 0x189   : > { %1217 = vmatpush.msrb.mxu0 %v1464_v29  ;;  %1178 = vmatmul.f32.vlgmr.msrb.gmra.mxu1 %v2372_v50 }
 0x18a   : > { %1218 = vmatmul.f32.vlgmr.msrb.gmra.mxu0 %v2372_v50 }
 0x1d4   : > { %v1139_v51 = vpop.f32.mrf.mxu2 }
 0x1e3   : > { %v1159_v48 = vpop.f32.mrf.mxu3 }
 0x1e4   : > { %v1160_v7 = vadd.f32 %v1159_v48, %v1139_v51 }
 0x1e6   : > { %1243 = vst [vmem:[%s219_s23 + $0x8] sm:$0xff] %v1160_v7 }
 0x1e7   : > { %v1099_v17 = vpop.f32.mrf.mxu0 }
 0x1f4   : > { %v1119_v54 = vpop.f32.mrf.mxu1 }
 0x1f5   : > { %v1120_v60 = vadd.f32 %v1119_v54, %v1099_v17 }
 0x1f7   : > { %1242 = vst [vmem:[%s219_s23] sm:$0xff] %v1120_v60  ;;  %v1239_v9 = vpop.f32.mrf.mxu2 }
 0x1f9   : > { %v1199_v52 = vpop.f32.mrf.mxu3 }
 0x206   : > { %v1179_v50 = vpop.f32.mrf.mxu1 }
 0x207   : > { %v1200_v61 = vadd.f32 %v1199_v52, %v1179_v50  ;;  %v1219_v24 = vpop.f32.mrf.mxu0 }
 0x208   : > { %v1240_v41 = vadd.f32 %v1239_v9, %v1219_v24 }
 0x209   : > { %1244 = vst [vmem:[%s219_s23 + $0x10] sm:$0xff] %v1200_v61 }
 0x20a   : > { %1245 = vst [vmem:[%s219_s23 + $0x18] sm:$0xff] %v1240_v41 }
 0x20b   : > { %1582 = shalt.err (!%p1579_p11)
}
 0x20c   : > { %1386 = dma.vmem_to_hbm [thread:$0]  (%p1738_p5), %s1261_s29, 512, %s1263_s30, %s1247_s4  }
 0x20d PF: > { %s1274_s11 = sand.u32 1, %s1613_s12   ;;  %p2633_p12 = scmp.ge.s32.totalorder %s1625_s15, 2 }
 0x20e   : > { %s1275_s22 = scalar_lea.sflag [#allocation6], %s1274_s11 }
 0x20f   : > { %p1400_p13 = pnand %p2633_p12, %p1704_p6 }
 0x211   : > { %p1401_p0 = pneg %p1400_p13 }
 0x213   : > { %1608 = dma.done.wait (%p1401_p0), %s1275_s22, 512  }
 0x214   : > { %1610 = vsyncadd (%p1401_p0), %s1275_s22, 4294966784  ;;  %p17_p3 = scmp.ge.s32.totalorder %s1725_s6, 4   ;;  %s2634_s12 = smov %s1617_s13 }
 0x215   : > { %s2635_s13 = smov %s1621_s14  ;;  %s2636_s14 = smov %s1734_s9 }
 0x216   : > { %s2637_s15 = smov %s1725_s6  ;;  %19 = sbr.rel (!%p17_p3) target bundleno = 6 (0x6), region = 112 }
 0x21b   :  { %1281 = vsyncpa [#allocation5], 1 }
 0x21c   :  { %1283 = vsyncpa [#allocation5 + $0x1], 1 }
 0x21d   :  { %1284 = vsyncpa [#allocation8], 1 }
 0x21e   :  { %1285 = vsyncpa [#allocation6], 1 }
 0x21f   :  { %1287 = vsyncpa [#allocation6 + $0x1], 1 }

</bundles_post_ra>
